<compile_context>
chip_gen: v6e
topology: v6e:2x2x1
jax: 0.10.0
libtpu: 0.0.40
codegen_flags: <defaults>
</compile_context>

<pallas_src>
import numpy as np
import jax
import jax.numpy as jnp
from jax import lax
from jax.experimental import pallas as pl
from jax.experimental.pallas import tpu as pltpu

N, CIN, H, W = 2, 4, 16, 16
COUT, KH, KW = 8, 3, 3
HO, WO = H // 2, W // 2
HP, WP = H + 2, W + 2
LIN = W * CIN          # 64  : packed input lane width      (w, cin)  -> w*CIN + cin
LPAD = WP * CIN        # 72  : packed padded-input lane width
LOUT = W * COUT        # 128 : packed conv-output lane width (w, cout) -> w*COUT + cout
LPOOL = WO * COUT      # 64  : packed pooled-output lane width
EPS = 1e-5


# ---------------------------------------------------------------------------
# Single fused kernel (gridless; whole problem is ~50 KB and lives in VMEM).
# ---------------------------------------------------------------------------
def fused_kernel(x_ref, wbig_ref, gamma_ref, beta_ref, sel_ref, selt_ref, psel_ref,
                 o_ref, xpad_ref, yc_ref):
    # x_ref    : (N, H, W*CIN)            packed NHWC input
    # wbig_ref : (KH*KW, W*CIN, W*COUT)   block-diagonal expanded conv weights
    # gamma/beta: (1, COUT)
    # sel_ref  : (W*COUT, COUT)   sums the W groups per channel   (stats reduction)
    # selt_ref : (COUT, W*COUT)   broadcasts a per-channel scalar to all W groups
    # psel_ref : (W*COUT, WO*COUT) picks even-w groups            (pool selection)
    # o_ref    : (N, HO, WO*COUT)          packed pooled output
    # xpad_ref : VMEM (N, H+2, (W+2)*CIN)  zero-padded packed input
    # yc_ref   : VMEM (N, H, W*COUT)       conv output (lane-dense, 128 lanes)

    # ---- 1) zero-pad the input inside VMEM (no host-side jnp.pad) ----------
    xpad_ref[...] = jnp.zeros_like(xpad_ref)
    xpad_ref[:, pl.ds(1, H), pl.ds(CIN, LIN)] = x_ref[...]

    # ---- 2) conv3x3, stride 1: 9 shifted lane-dense matmuls per image ------
    # acc[h, w*COUT+co] = sum_{kh,kw,ci} xpad[h+kh, (w+kw)*CIN+ci] * W[kh,kw,ci,co]
    for n in range(N):
        acc = jnp.zeros((H, LOUT), jnp.float32)
        for kh in range(KH):
            for kw in range(KW):
                rows = xpad_ref[n, pl.ds(kh, H), pl.ds(kw * CIN, LIN)]   # (16, 64)
                acc = acc + jnp.dot(rows, wbig_ref[kh * KW + kw],
                                    preferred_element_type=jnp.float32)  # (16, 128)
        yc_ref[n, :, :] = acc

    # ---- 3) BatchNorm statistics (training mode: biased batch variance) ----
    y = yc_ref[...]                                        # (N, H, 128)
    cnt = jnp.float32(N * H * W)
    t = jnp.sum(y, axis=0)                                 # (H, 128)  sum over batch
    ch_sum = jnp.dot(t, sel_ref[...], preferred_element_type=jnp.float32)   # (H, COUT)
    mean8 = jnp.sum(ch_sum, axis=0, keepdims=True) / cnt                    # (1, COUT)
    mean_l = jnp.dot(mean8, selt_ref[...], preferred_element_type=jnp.float32)  # (1, 128)
    d = y - mean_l
    t2 = jnp.sum(d * d, axis=0)                            # (H, 128)
    ch_sq = jnp.dot(t2, sel_ref[...], preferred_element_type=jnp.float32)
    var8 = jnp.sum(ch_sq, axis=0, keepdims=True) / cnt     # (1, COUT) biased variance
    inv8 = lax.rsqrt(var8 + EPS)
    scale8 = gamma_ref[...] * inv8                         # (1, COUT)
    shift8 = beta_ref[...] - mean8 * scale8                # (1, COUT)
    scale_l = jnp.dot(scale8, selt_ref[...], preferred_element_type=jnp.float32)  # (1,128)
    shift_l = jnp.dot(shift8, selt_ref[...], preferred_element_type=jnp.float32)  # (1,128)

    # ---- 4) normalize + ReLU + 2x2/2 maxpool (all on resident data) --------
    for n in range(N):
        z = jnp.maximum(y[n] * scale_l + shift_l, 0.0)      # (H, 128)
        # W-direction pool: pairwise max of neighbouring COUT-lane groups via a
        # circular lane roll (== shift by -COUT), then keep even groups via psel.
        zr = pltpu.roll(z, shift=LOUT - COUT, axis=1)       # zr[:, j] = z[:, j+COUT]
        m = jnp.maximum(z, zr)
        mw = jnp.dot(m, psel_ref[...], preferred_element_type=jnp.float32)  # (H, 64)
        # H-direction pool: static row pairs.
        for ho in range(HO):
            o_ref[n, pl.ds(ho, 1), :] = jnp.max(
                mw[2 * ho:2 * ho + 2, :], axis=0, keepdims=True)


# ---------------------------------------------------------------------------
# One-time (per weight set) constant preparation: block-diagonal conv weights
# and the small 0/1 selection matrices used inside the kernel.
# ---------------------------------------------------------------------------
def prepare_constants(w_hwio):
    # wbig[kh*KW+kw, a*CIN+ci, b*COUT+co] = w[kh,kw,ci,co] * (a == b)
    eye_w = jnp.eye(W, dtype=jnp.float32)
    wbig = jnp.einsum("ab,kqio->kqaibo", eye_w, w_hwio.astype(jnp.float32))
    wbig = wbig.reshape(KH * KW, LIN, LOUT)

    eye_c = np.eye(COUT, dtype=np.float32)
    sel = np.tile(eye_c, (W, 1))                       # (128, 8)
    selt = np.ascontiguousarray(sel.T)                 # (8, 128)
    psel = np.zeros((LOUT, LPOOL), dtype=np.float32)   # (128, 64)
    for wo in range(WO):
        psel[2 * wo * COUT:(2 * wo + 1) * COUT, wo * COUT:(wo + 1) * COUT] = eye_c
    return wbig, jnp.asarray(sel), jnp.asarray(selt), jnp.asarray(psel)


@jax.jit
def forward(x_nchw, w_hwio, gamma, beta):
    wbig, sel, selt, psel = prepare_constants(w_hwio)
    x_nhwc = jnp.transpose(x_nchw, (0, 2, 3, 1)).astype(jnp.float32)
    x_pack = x_nhwc.reshape(N, H, LIN)                 # free reshape (no transpose)
    out_pack = pl.pallas_call(
        fused_kernel,
        out_shape=jax.ShapeDtypeStruct((N, HO, LPOOL), jnp.float32),
        scratch_shapes=[
            pltpu.VMEM((N, HP, LPAD), jnp.float32),    # padded packed input
            pltpu.VMEM((N, H, LOUT), jnp.float32),     # conv output (lane-dense)
        ],
    )(x_pack, wbig, gamma, beta, sel, selt, psel)
    return out_pack.reshape(N, HO, WO, COUT)           # free reshape -> NHWC


# ---------------------------------------------------------------------------
# Pure-JAX reference (same semantics as the PyTorch module in training mode).
# ---------------------------------------------------------------------------
def reference(x_nchw, w_hwio, bias, gamma, beta):
    x = jnp.transpose(x_nchw, (0, 2, 3, 1)).astype(jnp.float32)
    y = lax.conv_general_dilated(
        x, w_hwio, window_strides=(1, 1), padding=((1, 1), (1, 1)),
        dimension_numbers=("NHWC", "HWIO", "NHWC"),
    ) + bias.reshape(1, 1, 1, COUT)
    mean = jnp.mean(y, axis=(0, 1, 2), keepdims=True)
    var = jnp.mean((y - mean) ** 2, axis=(0, 1, 2), keepdims=True)
    y = (y - mean) * lax.rsqrt(var + EPS)
    y = y * gamma.reshape(1, 1, 1, COUT) + beta.reshape(1, 1, 1, COUT)
    y = jnp.maximum(y, 0.0)
    y = lax.reduce_window(y, -jnp.inf, lax.max, (1, 2, 2, 1), (1, 2, 2, 1), "VALID")
    return y


if __name__ == "__main__":
    key = jax.random.PRNGKey(0)
    k_x, k_w = jax.random.split(key)

    # PyTorch-shaped input (NCHW).
    x = jax.random.normal(k_x, (N, CIN, H, W), dtype=jnp.float32)

    # Conv weights: xavier_uniform_ (gain=1); bias = 0 (matches _initialize_weights).
    fan_in, fan_out = CIN * KH * KW, COUT * KH * KW
    bound = float(np.sqrt(6.0 / (fan_in + fan_out)))
    w_oihw = jax.random.uniform(
        k_w, (COUT, CIN, KH, KW), minval=-bound, maxval=bound, dtype=jnp.float32)
    w_hwio = jnp.transpose(w_oihw, (2, 3, 1, 0))       # (KH, KW, CIN, COUT)
    # Conv bias is zero and is exactly cancelled by training-mode BN mean subtraction,
    # so the fused kernel omits it; the reference keeps it for full semantic fidelity.
    bias = jnp.zeros((COUT,), jnp.float32)

    # BatchNorm affine params (PyTorch defaults: gamma=1, beta=0).
    gamma = jnp.ones((1, COUT), jnp.float32)
    beta = jnp.zeros((1, COUT), jnp.float32)

    out = jax.block_until_ready(forward(x, w_hwio, gamma, beta))
    ref = jax.block_until_ready(reference(x, w_hwio, bias, gamma, beta))
    np.testing.assert_allclose(np.asarray(out), np.asarray(ref), rtol=1e-4, atol=1e-4)

    print("KERNEL_OK")
</pallas_src>

<mosaic_0001>
module attributes {stable_mosaic.version = 11 : i64} {
  func.func @fused_kernel(%arg0: memref<2x16x64xf32, #tpu.memory_space<vmem>>, %arg1: memref<9x64x128xf32, #tpu.memory_space<vmem>>, %arg2: memref<1x8xf32, #tpu.memory_space<vmem>>, %arg3: memref<1x8xf32, #tpu.memory_space<vmem>>, %arg4: memref<128x8xf32, #tpu.memory_space<vmem>>, %arg5: memref<8x128xf32, #tpu.memory_space<vmem>>, %arg6: memref<128x64xf32, #tpu.memory_space<vmem>>, %arg7: memref<2x8x64xf32, #tpu.memory_space<vmem>>, %arg8: memref<2x18x72xf32, #tpu.memory_space<vmem>>, %arg9: memref<2x16x128xf32, #tpu.memory_space<vmem>>) attributes {dimension_semantics = [], scalar_prefetch = 0 : i64, scratch_operands = 2 : i64, tpu.core_type = #tpu.core_type<tc>} {
    %cst = arith.constant 0.000000e+00 : f32
    %0 = vector.broadcast %cst : f32 to vector<2x18x72xf32>
    %c0 = arith.constant 0 : index
    %c0_0 = arith.constant 0 : index
    %c0_1 = arith.constant 0 : index
    %1 = vector.load %arg8[%c0, %c0_0, %c0_1] : memref<2x18x72xf32, #tpu.memory_space<vmem>>, vector<2x18x72xf32>
    tpu.vector_store %arg8[%c0, %c0_0, %c0_1], %0 {strides = array<i32>} : memref<2x18x72xf32, #tpu.memory_space<vmem>>, vector<2x18x72xf32>,
    %c0_2 = arith.constant 0 : index
    %c0_3 = arith.constant 0 : index
    %c0_4 = arith.constant 0 : index
    %2 = vector.load %arg0[%c0_2, %c0_3, %c0_4] : memref<2x16x64xf32, #tpu.memory_space<vmem>>, vector<2x16x64xf32>
    %c0_5 = arith.constant 0 : index
    %c1 = arith.constant 1 : index
    %c4 = arith.constant 4 : index
    %3 = vector.load %arg8[%c0_5, %c1, %c4] : memref<2x18x72xf32, #tpu.memory_space<vmem>>, vector<2x16x64xf32>
    tpu.vector_store %arg8[%c0_5, %c1, %c4], %2 {strides = array<i32>} : memref<2x18x72xf32, #tpu.memory_space<vmem>>, vector<2x16x64xf32>,
    %cst_6 = arith.constant 0.000000e+00 : f32
    %4 = vector.broadcast %cst_6 : f32 to vector<16x128xf32>
    %c0_7 = arith.constant 0 : index
    %c0_8 = arith.constant 0 : index
    %c0_9 = arith.constant 0 : index
    %5 = vector.load %arg8[%c0_7, %c0_8, %c0_9] : memref<2x18x72xf32, #tpu.memory_space<vmem>>, vector<1x16x64xf32>
    %6 = vector.shape_cast %5 : vector<1x16x64xf32> to vector<16x64xf32>
    %c0_10 = arith.constant 0 : index
    %c0_11 = arith.constant 0 : index
    %c0_12 = arith.constant 0 : index
    %7 = vector.load %arg1[%c0_10, %c0_11, %c0_12] : memref<9x64x128xf32, #tpu.memory_space<vmem>>, vector<1x64x128xf32>
    %8 = vector.shape_cast %7 : vector<1x64x128xf32> to vector<64x128xf32>
    %cst_13 = arith.constant dense<0.000000e+00> : vector<16x128xf32>
    %9 = tpu.matmul %6, %8, %cst_13 {dimension_numbers = #tpu.dot_dimension_numbers<[1], [0], [0], [1], [0, 0, 1, 1], [], []>} : vector<16x64xf32>, vector<64x128xf32>, vector<16x128xf32> -> vector<16x128xf32>
    %10 = arith.addf %4, %9 : vector<16x128xf32>
    %c0_14 = arith.constant 0 : index
    %c0_15 = arith.constant 0 : index
    %c4_16 = arith.constant 4 : index
    %11 = vector.load %arg8[%c0_14, %c0_15, %c4_16] : memref<2x18x72xf32, #tpu.memory_space<vmem>>, vector<1x16x64xf32>
    %12 = vector.shape_cast %11 : vector<1x16x64xf32> to vector<16x64xf32>
    %c1_17 = arith.constant 1 : index
    %c0_18 = arith.constant 0 : index
    %c0_19 = arith.constant 0 : index
    %13 = vector.load %arg1[%c1_17, %c0_18, %c0_19] : memref<9x64x128xf32, #tpu.memory_space<vmem>>, vector<1x64x128xf32>
    %14 = vector.shape_cast %13 : vector<1x64x128xf32> to vector<64x128xf32>
    %cst_20 = arith.constant dense<0.000000e+00> : vector<16x128xf32>
    %15 = tpu.matmul %12, %14, %cst_20 {dimension_numbers = #tpu.dot_dimension_numbers<[1], [0], [0], [1], [0, 0, 1, 1], [], []>} : vector<16x64xf32>, vector<64x128xf32>, vector<16x128xf32> -> vector<16x128xf32>
    %16 = arith.addf %10, %15 : vector<16x128xf32>
    %c0_21 = arith.constant 0 : index
    %c0_22 = arith.constant 0 : index
    %c8 = arith.constant 8 : index
    %17 = vector.load %arg8[%c0_21, %c0_22, %c8] : memref<2x18x72xf32, #tpu.memory_space<vmem>>, vector<1x16x64xf32>
    %18 = vector.shape_cast %17 : vector<1x16x64xf32> to vector<16x64xf32>
    %c2 = arith.constant 2 : index
    %c0_23 = arith.constant 0 : index
    %c0_24 = arith.constant 0 : index
    %19 = vector.load %arg1[%c2, %c0_23, %c0_24] : memref<9x64x128xf32, #tpu.memory_space<vmem>>, vector<1x64x128xf32>
    %20 = vector.shape_cast %19 : vector<1x64x128xf32> to vector<64x128xf32>
    %cst_25 = arith.constant dense<0.000000e+00> : vector<16x128xf32>
    %21 = tpu.matmul %18, %20, %cst_25 {dimension_numbers = #tpu.dot_dimension_numbers<[1], [0], [0], [1], [0, 0, 1, 1], [], []>} : vector<16x64xf32>, vector<64x128xf32>, vector<16x128xf32> -> vector<16x128xf32>
    %22 = arith.addf %16, %21 : vector<16x128xf32>
    %c0_26 = arith.constant 0 : index
    %c1_27 = arith.constant 1 : index
    %c0_28 = arith.constant 0 : index
    %23 = vector.load %arg8[%c0_26, %c1_27, %c0_28] : memref<2x18x72xf32, #tpu.memory_space<vmem>>, vector<1x16x64xf32>
    %24 = vector.shape_cast %23 : vector<1x16x64xf32> to vector<16x64xf32>
    %c3 = arith.constant 3 : index
    %c0_29 = arith.constant 0 : index
    %c0_30 = arith.constant 0 : index
    %25 = vector.load %arg1[%c3, %c0_29, %c0_30] : memref<9x64x128xf32, #tpu.memory_space<vmem>>, vector<1x64x128xf32>
    %26 = vector.shape_cast %25 : vector<1x64x128xf32> to vector<64x128xf32>
    %cst_31 = arith.constant dense<0.000000e+00> : vector<16x128xf32>
    %27 = tpu.matmul %24, %26, %cst_31 {dimension_numbers = #tpu.dot_dimension_numbers<[1], [0], [0], [1], [0, 0, 1, 1], [], []>} : vector<16x64xf32>, vector<64x128xf32>, vector<16x128xf32> -> vector<16x128xf32>
    %28 = arith.addf %22, %27 : vector<16x128xf32>
    %c0_32 = arith.constant 0 : index
    %c1_33 = arith.constant 1 : index
    %c4_34 = arith.constant 4 : index
    %29 = vector.load %arg8[%c0_32, %c1_33, %c4_34] : memref<2x18x72xf32, #tpu.memory_space<vmem>>, vector<1x16x64xf32>
    %30 = vector.shape_cast %29 : vector<1x16x64xf32> to vector<16x64xf32>
    %c4_35 = arith.constant 4 : index
    %c0_36 = arith.constant 0 : index
    %c0_37 = arith.constant 0 : index
    %31 = vector.load %arg1[%c4_35, %c0_36, %c0_37] : memref<9x64x128xf32, #tpu.memory_space<vmem>>, vector<1x64x128xf32>
    %32 = vector.shape_cast %31 : vector<1x64x128xf32> to vector<64x128xf32>
    %cst_38 = arith.constant dense<0.000000e+00> : vector<16x128xf32>
    %33 = tpu.matmul %30, %32, %cst_38 {dimension_numbers = #tpu.dot_dimension_numbers<[1], [0], [0], [1], [0, 0, 1, 1], [], []>} : vector<16x64xf32>, vector<64x128xf32>, vector<16x128xf32> -> vector<16x128xf32>
    %34 = arith.addf %28, %33 : vector<16x128xf32>
    %c0_39 = arith.constant 0 : index
    %c1_40 = arith.constant 1 : index
    %c8_41 = arith.constant 8 : index
    %35 = vector.load %arg8[%c0_39, %c1_40, %c8_41] : memref<2x18x72xf32, #tpu.memory_space<vmem>>, vector<1x16x64xf32>
    %36 = vector.shape_cast %35 : vector<1x16x64xf32> to vector<16x64xf32>
    %c5 = arith.constant 5 : index
    %c0_42 = arith.constant 0 : index
    %c0_43 = arith.constant 0 : index
    %37 = vector.load %arg1[%c5, %c0_42, %c0_43] : memref<9x64x128xf32, #tpu.memory_space<vmem>>, vector<1x64x128xf32>
    %38 = vector.shape_cast %37 : vector<1x64x128xf32> to vector<64x128xf32>
    %cst_44 = arith.constant dense<0.000000e+00> : vector<16x128xf32>
    %39 = tpu.matmul %36, %38, %cst_44 {dimension_numbers = #tpu.dot_dimension_numbers<[1], [0], [0], [1], [0, 0, 1, 1], [], []>} : vector<16x64xf32>, vector<64x128xf32>, vector<16x128xf32> -> vector<16x128xf32>
    %40 = arith.addf %34, %39 : vector<16x128xf32>
    %c0_45 = arith.constant 0 : index
    %c2_46 = arith.constant 2 : index
    %c0_47 = arith.constant 0 : index
    %41 = vector.load %arg8[%c0_45, %c2_46, %c0_47] : memref<2x18x72xf32, #tpu.memory_space<vmem>>, vector<1x16x64xf32>
    %42 = vector.shape_cast %41 : vector<1x16x64xf32> to vector<16x64xf32>
    %c6 = arith.constant 6 : index
    %c0_48 = arith.constant 0 : index
    %c0_49 = arith.constant 0 : index
    %43 = vector.load %arg1[%c6, %c0_48, %c0_49] : memref<9x64x128xf32, #tpu.memory_space<vmem>>, vector<1x64x128xf32>
    %44 = vector.shape_cast %43 : vector<1x64x128xf32> to vector<64x128xf32>
    %cst_50 = arith.constant dense<0.000000e+00> : vector<16x128xf32>
    %45 = tpu.matmul %42, %44, %cst_50 {dimension_numbers = #tpu.dot_dimension_numbers<[1], [0], [0], [1], [0, 0, 1, 1], [], []>} : vector<16x64xf32>, vector<64x128xf32>, vector<16x128xf32> -> vector<16x128xf32>
    %46 = arith.addf %40, %45 : vector<16x128xf32>
    %c0_51 = arith.constant 0 : index
    %c2_52 = arith.constant 2 : index
    %c4_53 = arith.constant 4 : index
    %47 = vector.load %arg8[%c0_51, %c2_52, %c4_53] : memref<2x18x72xf32, #tpu.memory_space<vmem>>, vector<1x16x64xf32>
    %48 = vector.shape_cast %47 : vector<1x16x64xf32> to vector<16x64xf32>
    %c7 = arith.constant 7 : index
    %c0_54 = arith.constant 0 : index
    %c0_55 = arith.constant 0 : index
    %49 = vector.load %arg1[%c7, %c0_54, %c0_55] : memref<9x64x128xf32, #tpu.memory_space<vmem>>, vector<1x64x128xf32>
    %50 = vector.shape_cast %49 : vector<1x64x128xf32> to vector<64x128xf32>
    %cst_56 = arith.constant dense<0.000000e+00> : vector<16x128xf32>
    %51 = tpu.matmul %48, %50, %cst_56 {dimension_numbers = #tpu.dot_dimension_numbers<[1], [0], [0], [1], [0, 0, 1, 1], [], []>} : vector<16x64xf32>, vector<64x128xf32>, vector<16x128xf32> -> vector<16x128xf32>
    %52 = arith.addf %46, %51 : vector<16x128xf32>
    %c0_57 = arith.constant 0 : index
    %c2_58 = arith.constant 2 : index
    %c8_59 = arith.constant 8 : index
    %53 = vector.load %arg8[%c0_57, %c2_58, %c8_59] : memref<2x18x72xf32, #tpu.memory_space<vmem>>, vector<1x16x64xf32>
    %54 = vector.shape_cast %53 : vector<1x16x64xf32> to vector<16x64xf32>
    %c8_60 = arith.constant 8 : index
    %c0_61 = arith.constant 0 : index
    %c0_62 = arith.constant 0 : index
    %55 = vector.load %arg1[%c8_60, %c0_61, %c0_62] : memref<9x64x128xf32, #tpu.memory_space<vmem>>, vector<1x64x128xf32>
    %56 = vector.shape_cast %55 : vector<1x64x128xf32> to vector<64x128xf32>
    %cst_63 = arith.constant dense<0.000000e+00> : vector<16x128xf32>
    %57 = tpu.matmul %54, %56, %cst_63 {dimension_numbers = #tpu.dot_dimension_numbers<[1], [0], [0], [1], [0, 0, 1, 1], [], []>} : vector<16x64xf32>, vector<64x128xf32>, vector<16x128xf32> -> vector<16x128xf32>
    %58 = arith.addf %52, %57 : vector<16x128xf32>
    %c0_64 = arith.constant 0 : index
    %c0_65 = arith.constant 0 : index
    %c0_66 = arith.constant 0 : index
    %59 = vector.load %arg9[%c0_64, %c0_65, %c0_66] : memref<2x16x128xf32, #tpu.memory_space<vmem>>, vector<1x16x128xf32>
    %60 = vector.shape_cast %59 : vector<1x16x128xf32> to vector<16x128xf32>
    %61 = vector.shape_cast %58 : vector<16x128xf32> to vector<1x16x128xf32>
    tpu.vector_store %arg9[%c0_64, %c0_65, %c0_66], %61 {strides = array<i32>} : memref<2x16x128xf32, #tpu.memory_space<vmem>>, vector<1x16x128xf32>,
    %cst_67 = arith.constant 0.000000e+00 : f32
    %62 = vector.broadcast %cst_67 : f32 to vector<16x128xf32>
    %c1_68 = arith.constant 1 : index
    %c0_69 = arith.constant 0 : index
    %c0_70 = arith.constant 0 : index
    %63 = vector.load %arg8[%c1_68, %c0_69, %c0_70] : memref<2x18x72xf32, #tpu.memory_space<vmem>>, vector<1x16x64xf32>
    %64 = vector.shape_cast %63 : vector<1x16x64xf32> to vector<16x64xf32>
    %c0_71 = arith.constant 0 : index
    %c0_72 = arith.constant 0 : index
    %c0_73 = arith.constant 0 : index
    %65 = vector.load %arg1[%c0_71, %c0_72, %c0_73] : memref<9x64x128xf32, #tpu.memory_space<vmem>>, vector<1x64x128xf32>
    %66 = vector.shape_cast %65 : vector<1x64x128xf32> to vector<64x128xf32>
    %cst_74 = arith.constant dense<0.000000e+00> : vector<16x128xf32>
    %67 = tpu.matmul %64, %66, %cst_74 {dimension_numbers = #tpu.dot_dimension_numbers<[1], [0], [0], [1], [0, 0, 1, 1], [], []>} : vector<16x64xf32>, vector<64x128xf32>, vector<16x128xf32> -> vector<16x128xf32>
    %68 = arith.addf %62, %67 : vector<16x128xf32>
    %c1_75 = arith.constant 1 : index
    %c0_76 = arith.constant 0 : index
    %c4_77 = arith.constant 4 : index
    %69 = vector.load %arg8[%c1_75, %c0_76, %c4_77] : memref<2x18x72xf32, #tpu.memory_space<vmem>>, vector<1x16x64xf32>
    %70 = vector.shape_cast %69 : vector<1x16x64xf32> to vector<16x64xf32>
    %c1_78 = arith.constant 1 : index
    %c0_79 = arith.constant 0 : index
    %c0_80 = arith.constant 0 : index
    %71 = vector.load %arg1[%c1_78, %c0_79, %c0_80] : memref<9x64x128xf32, #tpu.memory_space<vmem>>, vector<1x64x128xf32>
    %72 = vector.shape_cast %71 : vector<1x64x128xf32> to vector<64x128xf32>
    %cst_81 = arith.constant dense<0.000000e+00> : vector<16x128xf32>
    %73 = tpu.matmul %70, %72, %cst_81 {dimension_numbers = #tpu.dot_dimension_numbers<[1], [0], [0], [1], [0, 0, 1, 1], [], []>} : vector<16x64xf32>, vector<64x128xf32>, vector<16x128xf32> -> vector<16x128xf32>
    %74 = arith.addf %68, %73 : vector<16x128xf32>
    %c1_82 = arith.constant 1 : index
    %c0_83 = arith.constant 0 : index
    %c8_84 = arith.constant 8 : index
    %75 = vector.load %arg8[%c1_82, %c0_83, %c8_84] : memref<2x18x72xf32, #tpu.memory_space<vmem>>, vector<1x16x64xf32>
    %76 = vector.shape_cast %75 : vector<1x16x64xf32> to vector<16x64xf32>
    %c2_85 = arith.constant 2 : index
    %c0_86 = arith.constant 0 : index
    %c0_87 = arith.constant 0 : index
    %77 = vector.load %arg1[%c2_85, %c0_86, %c0_87] : memref<9x64x128xf32, #tpu.memory_space<vmem>>, vector<1x64x128xf32>
    %78 = vector.shape_cast %77 : vector<1x64x128xf32> to vector<64x128xf32>
    %cst_88 = arith.constant dense<0.000000e+00> : vector<16x128xf32>
    %79 = tpu.matmul %76, %78, %cst_88 {dimension_numbers = #tpu.dot_dimension_numbers<[1], [0], [0], [1], [0, 0, 1, 1], [], []>} : vector<16x64xf32>, vector<64x128xf32>, vector<16x128xf32> -> vector<16x128xf32>
    %80 = arith.addf %74, %79 : vector<16x128xf32>
    %c1_89 = arith.constant 1 : index
    %c1_90 = arith.constant 1 : index
    %c0_91 = arith.constant 0 : index
    %81 = vector.load %arg8[%c1_89, %c1_90, %c0_91] : memref<2x18x72xf32, #tpu.memory_space<vmem>>, vector<1x16x64xf32>
    %82 = vector.shape_cast %81 : vector<1x16x64xf32> to vector<16x64xf32>
    %c3_92 = arith.constant 3 : index
    %c0_93 = arith.constant 0 : index
    %c0_94 = arith.constant 0 : index
    %83 = vector.load %arg1[%c3_92, %c0_93, %c0_94] : memref<9x64x128xf32, #tpu.memory_space<vmem>>, vector<1x64x128xf32>
    %84 = vector.shape_cast %83 : vector<1x64x128xf32> to vector<64x128xf32>
    %cst_95 = arith.constant dense<0.000000e+00> : vector<16x128xf32>
    %85 = tpu.matmul %82, %84, %cst_95 {dimension_numbers = #tpu.dot_dimension_numbers<[1], [0], [0], [1], [0, 0, 1, 1], [], []>} : vector<16x64xf32>, vector<64x128xf32>, vector<16x128xf32> -> vector<16x128xf32>
    %86 = arith.addf %80, %85 : vector<16x128xf32>
    %c1_96 = arith.constant 1 : index
    %c1_97 = arith.constant 1 : index
    %c4_98 = arith.constant 4 : index
    %87 = vector.load %arg8[%c1_96, %c1_97, %c4_98] : memref<2x18x72xf32, #tpu.memory_space<vmem>>, vector<1x16x64xf32>
    %88 = vector.shape_cast %87 : vector<1x16x64xf32> to vector<16x64xf32>
    %c4_99 = arith.constant 4 : index
    %c0_100 = arith.constant 0 : index
    %c0_101 = arith.constant 0 : index
    %89 = vector.load %arg1[%c4_99, %c0_100, %c0_101] : memref<9x64x128xf32, #tpu.memory_space<vmem>>, vector<1x64x128xf32>
    %90 = vector.shape_cast %89 : vector<1x64x128xf32> to vector<64x128xf32>
    %cst_102 = arith.constant dense<0.000000e+00> : vector<16x128xf32>
    %91 = tpu.matmul %88, %90, %cst_102 {dimension_numbers = #tpu.dot_dimension_numbers<[1], [0], [0], [1], [0, 0, 1, 1], [], []>} : vector<16x64xf32>, vector<64x128xf32>, vector<16x128xf32> -> vector<16x128xf32>
    %92 = arith.addf %86, %91 : vector<16x128xf32>
    %c1_103 = arith.constant 1 : index
    %c1_104 = arith.constant 1 : index
    %c8_105 = arith.constant 8 : index
    %93 = vector.load %arg8[%c1_103, %c1_104, %c8_105] : memref<2x18x72xf32, #tpu.memory_space<vmem>>, vector<1x16x64xf32>
    %94 = vector.shape_cast %93 : vector<1x16x64xf32> to vector<16x64xf32>
    %c5_106 = arith.constant 5 : index
    %c0_107 = arith.constant 0 : index
    %c0_108 = arith.constant 0 : index
    %95 = vector.load %arg1[%c5_106, %c0_107, %c0_108] : memref<9x64x128xf32, #tpu.memory_space<vmem>>, vector<1x64x128xf32>
    %96 = vector.shape_cast %95 : vector<1x64x128xf32> to vector<64x128xf32>
    %cst_109 = arith.constant dense<0.000000e+00> : vector<16x128xf32>
    %97 = tpu.matmul %94, %96, %cst_109 {dimension_numbers = #tpu.dot_dimension_numbers<[1], [0], [0], [1], [0, 0, 1, 1], [], []>} : vector<16x64xf32>, vector<64x128xf32>, vector<16x128xf32> -> vector<16x128xf32>
    %98 = arith.addf %92, %97 : vector<16x128xf32>
    %c1_110 = arith.constant 1 : index
    %c2_111 = arith.constant 2 : index
    %c0_112 = arith.constant 0 : index
    %99 = vector.load %arg8[%c1_110, %c2_111, %c0_112] : memref<2x18x72xf32, #tpu.memory_space<vmem>>, vector<1x16x64xf32>
    %100 = vector.shape_cast %99 : vector<1x16x64xf32> to vector<16x64xf32>
    %c6_113 = arith.constant 6 : index
    %c0_114 = arith.constant 0 : index
    %c0_115 = arith.constant 0 : index
    %101 = vector.load %arg1[%c6_113, %c0_114, %c0_115] : memref<9x64x128xf32, #tpu.memory_space<vmem>>, vector<1x64x128xf32>
    %102 = vector.shape_cast %101 : vector<1x64x128xf32> to vector<64x128xf32>
    %cst_116 = arith.constant dense<0.000000e+00> : vector<16x128xf32>
    %103 = tpu.matmul %100, %102, %cst_116 {dimension_numbers = #tpu.dot_dimension_numbers<[1], [0], [0], [1], [0, 0, 1, 1], [], []>} : vector<16x64xf32>, vector<64x128xf32>, vector<16x128xf32> -> vector<16x128xf32>
    %104 = arith.addf %98, %103 : vector<16x128xf32>
    %c1_117 = arith.constant 1 : index
    %c2_118 = arith.constant 2 : index
    %c4_119 = arith.constant 4 : index
    %105 = vector.load %arg8[%c1_117, %c2_118, %c4_119] : memref<2x18x72xf32, #tpu.memory_space<vmem>>, vector<1x16x64xf32>
    %106 = vector.shape_cast %105 : vector<1x16x64xf32> to vector<16x64xf32>
    %c7_120 = arith.constant 7 : index
    %c0_121 = arith.constant 0 : index
    %c0_122 = arith.constant 0 : index
    %107 = vector.load %arg1[%c7_120, %c0_121, %c0_122] : memref<9x64x128xf32, #tpu.memory_space<vmem>>, vector<1x64x128xf32>
    %108 = vector.shape_cast %107 : vector<1x64x128xf32> to vector<64x128xf32>
    %cst_123 = arith.constant dense<0.000000e+00> : vector<16x128xf32>
    %109 = tpu.matmul %106, %108, %cst_123 {dimension_numbers = #tpu.dot_dimension_numbers<[1], [0], [0], [1], [0, 0, 1, 1], [], []>} : vector<16x64xf32>, vector<64x128xf32>, vector<16x128xf32> -> vector<16x128xf32>
    %110 = arith.addf %104, %109 : vector<16x128xf32>
    %c1_124 = arith.constant 1 : index
    %c2_125 = arith.constant 2 : index
    %c8_126 = arith.constant 8 : index
    %111 = vector.load %arg8[%c1_124, %c2_125, %c8_126] : memref<2x18x72xf32, #tpu.memory_space<vmem>>, vector<1x16x64xf32>
    %112 = vector.shape_cast %111 : vector<1x16x64xf32> to vector<16x64xf32>
    %c8_127 = arith.constant 8 : index
    %c0_128 = arith.constant 0 : index
    %c0_129 = arith.constant 0 : index
    %113 = vector.load %arg1[%c8_127, %c0_128, %c0_129] : memref<9x64x128xf32, #tpu.memory_space<vmem>>, vector<1x64x128xf32>
    %114 = vector.shape_cast %113 : vector<1x64x128xf32> to vector<64x128xf32>
    %cst_130 = arith.constant dense<0.000000e+00> : vector<16x128xf32>
    %115 = tpu.matmul %112, %114, %cst_130 {dimension_numbers = #tpu.dot_dimension_numbers<[1], [0], [0], [1], [0, 0, 1, 1], [], []>} : vector<16x64xf32>, vector<64x128xf32>, vector<16x128xf32> -> vector<16x128xf32>
    %116 = arith.addf %110, %115 : vector<16x128xf32>
    %c1_131 = arith.constant 1 : index
    %c0_132 = arith.constant 0 : index
    %c0_133 = arith.constant 0 : index
    %117 = vector.load %arg9[%c1_131, %c0_132, %c0_133] : memref<2x16x128xf32, #tpu.memory_space<vmem>>, vector<1x16x128xf32>
    %118 = vector.shape_cast %117 : vector<1x16x128xf32> to vector<16x128xf32>
    %119 = vector.shape_cast %116 : vector<16x128xf32> to vector<1x16x128xf32>
    tpu.vector_store %arg9[%c1_131, %c0_132, %c0_133], %119 {strides = array<i32>} : memref<2x16x128xf32, #tpu.memory_space<vmem>>, vector<1x16x128xf32>,
    %c0_134 = arith.constant 0 : index
    %c0_135 = arith.constant 0 : index
    %c0_136 = arith.constant 0 : index
    %120 = vector.load %arg9[%c0_134, %c0_135, %c0_136] : memref<2x16x128xf32, #tpu.memory_space<vmem>>, vector<2x16x128xf32>
    %cst_137 = arith.constant dense<0.000000e+00> : vector<16x128xf32>
    %121 = vector.multi_reduction <add>, %120, %cst_137 [0] : vector<2x16x128xf32> to vector<16x128xf32>
    %c0_138 = arith.constant 0 : index
    %c0_139 = arith.constant 0 : index
    %122 = vector.load %arg4[%c0_138, %c0_139] : memref<128x8xf32, #tpu.memory_space<vmem>>, vector<128x8xf32>
    %cst_140 = arith.constant dense<0.000000e+00> : vector<16x8xf32>
    %123 = tpu.matmul %121, %122, %cst_140 {dimension_numbers = #tpu.dot_dimension_numbers<[1], [0], [0], [1], [0, 0, 1, 1], [], []>} : vector<16x128xf32>, vector<128x8xf32>, vector<16x8xf32> -> vector<16x8xf32>
    %cst_141 = arith.constant dense<0.000000e+00> : vector<8xf32>
    %124 = vector.multi_reduction <add>, %123, %cst_141 [0] : vector<16x8xf32> to vector<8xf32>
    %125 = vector.shape_cast %124 : vector<8xf32> to vector<1x8xf32>
    %cst_142 = arith.constant 5.120000e+02 : f32
    %126 = vector.broadcast %cst_142 : f32 to vector<1x8xf32>
    %127 = arith.divf %125, %126 : vector<1x8xf32>
    %c0_143 = arith.constant 0 : index
    %c0_144 = arith.constant 0 : index
    %128 = vector.load %arg5[%c0_143, %c0_144] : memref<8x128xf32, #tpu.memory_space<vmem>>, vector<8x128xf32>
    %cst_145 = arith.constant dense<0.000000e+00> : vector<1x128xf32>
    %129 = tpu.matmul %127, %128, %cst_145 {dimension_numbers = #tpu.dot_dimension_numbers<[1], [0], [0], [1], [0, 0, 1, 1], [], []>} : vector<1x8xf32>, vector<8x128xf32>, vector<1x128xf32> -> vector<1x128xf32>
    %130 = vector.shape_cast %129 : vector<1x128xf32> to vector<1x1x128xf32>
    %131 = vector.broadcast %130 : vector<1x1x128xf32> to vector<2x16x128xf32>
    %132 = arith.subf %120, %131 : vector<2x16x128xf32>
    %133 = arith.mulf %132, %132 : vector<2x16x128xf32>
    %cst_146 = arith.constant dense<0.000000e+00> : vector<16x128xf32>
    %134 = vector.multi_reduction <add>, %133, %cst_146 [0] : vector<2x16x128xf32> to vector<16x128xf32>
    %c0_147 = arith.constant 0 : index
    %c0_148 = arith.constant 0 : index
    %135 = vector.load %arg4[%c0_147, %c0_148] : memref<128x8xf32, #tpu.memory_space<vmem>>, vector<128x8xf32>
    %cst_149 = arith.constant dense<0.000000e+00> : vector<16x8xf32>
    %136 = tpu.matmul %134, %135, %cst_149 {dimension_numbers = #tpu.dot_dimension_numbers<[1], [0], [0], [1], [0, 0, 1, 1], [], []>} : vector<16x128xf32>, vector<128x8xf32>, vector<16x8xf32> -> vector<16x8xf32>
    %cst_150 = arith.constant dense<0.000000e+00> : vector<8xf32>
    %137 = vector.multi_reduction <add>, %136, %cst_150 [0] : vector<16x8xf32> to vector<8xf32>
    %138 = vector.shape_cast %137 : vector<8xf32> to vector<1x8xf32>
    %cst_151 = arith.constant 5.120000e+02 : f32
    %139 = vector.broadcast %cst_151 : f32 to vector<1x8xf32>
    %140 = arith.divf %138, %139 : vector<1x8xf32>
    %cst_152 = arith.constant 9.99999974E-6 : f32
    %141 = vector.broadcast %cst_152 : f32 to vector<1x8xf32>
    %142 = arith.addf %140, %141 : vector<1x8xf32>
    %143 = math.rsqrt %142 : vector<1x8xf32>
    %c0_153 = arith.constant 0 : index
    %c0_154 = arith.constant 0 : index
    %144 = vector.load %arg2[%c0_153, %c0_154] : memref<1x8xf32, #tpu.memory_space<vmem>>, vector<1x8xf32>
    %145 = arith.mulf %144, %143 : vector<1x8xf32>
    %c0_155 = arith.constant 0 : index
    %c0_156 = arith.constant 0 : index
    %146 = vector.load %arg3[%c0_155, %c0_156] : memref<1x8xf32, #tpu.memory_space<vmem>>, vector<1x8xf32>
    %147 = arith.mulf %127, %145 : vector<1x8xf32>
    %148 = arith.subf %146, %147 : vector<1x8xf32>
    %c0_157 = arith.constant 0 : index
    %c0_158 = arith.constant 0 : index
    %149 = vector.load %arg5[%c0_157, %c0_158] : memref<8x128xf32, #tpu.memory_space<vmem>>, vector<8x128xf32>
    %cst_159 = arith.constant dense<0.000000e+00> : vector<1x128xf32>
    %150 = tpu.matmul %145, %149, %cst_159 {dimension_numbers = #tpu.dot_dimension_numbers<[1], [0], [0], [1], [0, 0, 1, 1], [], []>} : vector<1x8xf32>, vector<8x128xf32>, vector<1x128xf32> -> vector<1x128xf32>
    %c0_160 = arith.constant 0 : index
    %c0_161 = arith.constant 0 : index
    %151 = vector.load %arg5[%c0_160, %c0_161] : memref<8x128xf32, #tpu.memory_space<vmem>>, vector<8x128xf32>
    %cst_162 = arith.constant dense<0.000000e+00> : vector<1x128xf32>
    %152 = tpu.matmul %148, %151, %cst_162 {dimension_numbers = #tpu.dot_dimension_numbers<[1], [0], [0], [1], [0, 0, 1, 1], [], []>} : vector<1x8xf32>, vector<8x128xf32>, vector<1x128xf32> -> vector<1x128xf32>
    %153 = vector.extract_strided_slice %120 {offsets = [0, 0, 0], sizes = [1, 16, 128], strides = [1, 1, 1]} : vector<2x16x128xf32> to vector<1x16x128xf32>
    %154 = vector.shape_cast %153 : vector<1x16x128xf32> to vector<16x128xf32>
    %155 = vector.broadcast %150 : vector<1x128xf32> to vector<16x128xf32>
    %156 = arith.mulf %154, %155 : vector<16x128xf32>
    %157 = vector.broadcast %152 : vector<1x128xf32> to vector<16x128xf32>
    %158 = arith.addf %156, %157 : vector<16x128xf32>
    %cst_163 = arith.constant 0.000000e+00 : f32
    %159 = vector.broadcast %cst_163 : f32 to vector<16x128xf32>
    %160 = arith.maximumf %158, %159 : vector<16x128xf32>
    %c120_i32 = arith.constant 120 : i32
    %161 = tpu.dynamic_rotate %160 by %c120_i32 dim 1 : vector<16x128xf32>, i32 -> vector<16x128xf32>
    %162 = arith.maximumf %160, %161 : vector<16x128xf32>
    %c0_164 = arith.constant 0 : index
    %c0_165 = arith.constant 0 : index
    %163 = vector.load %arg6[%c0_164, %c0_165] : memref<128x64xf32, #tpu.memory_space<vmem>>, vector<128x64xf32>
    %cst_166 = arith.constant dense<0.000000e+00> : vector<16x64xf32>
    %164 = tpu.matmul %162, %163, %cst_166 {dimension_numbers = #tpu.dot_dimension_numbers<[1], [0], [0], [1], [0, 0, 1, 1], [], []>} : vector<16x128xf32>, vector<128x64xf32>, vector<16x64xf32> -> vector<16x64xf32>
    %165 = vector.extract_strided_slice %164 {offsets = [0, 0], sizes = [2, 64], strides = [1, 1]} : vector<16x64xf32> to vector<2x64xf32>
    %cst_167 = arith.constant dense<0xFF800000> : vector<64xf32>
    %166 = vector.multi_reduction <maximumf>, %165, %cst_167 [0] : vector<2x64xf32> to vector<64xf32>
    %167 = vector.shape_cast %166 : vector<64xf32> to vector<1x64xf32>
    %c0_168 = arith.constant 0 : index
    %c0_169 = arith.constant 0 : index
    %c0_170 = arith.constant 0 : index
    %168 = vector.load %arg7[%c0_168, %c0_169, %c0_170] : memref<2x8x64xf32, #tpu.memory_space<vmem>>, vector<1x1x64xf32>
    %169 = vector.shape_cast %168 : vector<1x1x64xf32> to vector<1x64xf32>
    %170 = vector.shape_cast %167 : vector<1x64xf32> to vector<1x1x64xf32>
    tpu.vector_store %arg7[%c0_168, %c0_169, %c0_170], %170 {strides = array<i32>} : memref<2x8x64xf32, #tpu.memory_space<vmem>>, vector<1x1x64xf32>,
    %171 = vector.extract_strided_slice %164 {offsets = [2, 0], sizes = [2, 64], strides = [1, 1]} : vector<16x64xf32> to vector<2x64xf32>
    %cst_171 = arith.constant dense<0xFF800000> : vector<64xf32>
    %172 = vector.multi_reduction <maximumf>, %171, %cst_171 [0] : vector<2x64xf32> to vector<64xf32>
    %173 = vector.shape_cast %172 : vector<64xf32> to vector<1x64xf32>
    %c0_172 = arith.constant 0 : index
    %c1_173 = arith.constant 1 : index
    %c0_174 = arith.constant 0 : index
    %174 = vector.load %arg7[%c0_172, %c1_173, %c0_174] : memref<2x8x64xf32, #tpu.memory_space<vmem>>, vector<1x1x64xf32>
    %175 = vector.shape_cast %174 : vector<1x1x64xf32> to vector<1x64xf32>
    %176 = vector.shape_cast %173 : vector<1x64xf32> to vector<1x1x64xf32>
    tpu.vector_store %arg7[%c0_172, %c1_173, %c0_174], %176 {strides = array<i32>} : memref<2x8x64xf32, #tpu.memory_space<vmem>>, vector<1x1x64xf32>,
    %177 = vector.extract_strided_slice %164 {offsets = [4, 0], sizes = [2, 64], strides = [1, 1]} : vector<16x64xf32> to vector<2x64xf32>
    %cst_175 = arith.constant dense<0xFF800000> : vector<64xf32>
    %178 = vector.multi_reduction <maximumf>, %177, %cst_175 [0] : vector<2x64xf32> to vector<64xf32>
    %179 = vector.shape_cast %178 : vector<64xf32> to vector<1x64xf32>
    %c0_176 = arith.constant 0 : index
    %c2_177 = arith.constant 2 : index
    %c0_178 = arith.constant 0 : index
    %180 = vector.load %arg7[%c0_176, %c2_177, %c0_178] : memref<2x8x64xf32, #tpu.memory_space<vmem>>, vector<1x1x64xf32>
    %181 = vector.shape_cast %180 : vector<1x1x64xf32> to vector<1x64xf32>
    %182 = vector.shape_cast %179 : vector<1x64xf32> to vector<1x1x64xf32>
    tpu.vector_store %arg7[%c0_176, %c2_177, %c0_178], %182 {strides = array<i32>} : memref<2x8x64xf32, #tpu.memory_space<vmem>>, vector<1x1x64xf32>,
    %183 = vector.extract_strided_slice %164 {offsets = [6, 0], sizes = [2, 64], strides = [1, 1]} : vector<16x64xf32> to vector<2x64xf32>
    %cst_179 = arith.constant dense<0xFF800000> : vector<64xf32>
    %184 = vector.multi_reduction <maximumf>, %183, %cst_179 [0] : vector<2x64xf32> to vector<64xf32>
    %185 = vector.shape_cast %184 : vector<64xf32> to vector<1x64xf32>
    %c0_180 = arith.constant 0 : index
    %c3_181 = arith.constant 3 : index
    %c0_182 = arith.constant 0 : index
    %186 = vector.load %arg7[%c0_180, %c3_181, %c0_182] : memref<2x8x64xf32, #tpu.memory_space<vmem>>, vector<1x1x64xf32>
    %187 = vector.shape_cast %186 : vector<1x1x64xf32> to vector<1x64xf32>
    %188 = vector.shape_cast %185 : vector<1x64xf32> to vector<1x1x64xf32>
    tpu.vector_store %arg7[%c0_180, %c3_181, %c0_182], %188 {strides = array<i32>} : memref<2x8x64xf32, #tpu.memory_space<vmem>>, vector<1x1x64xf32>,
    %189 = vector.extract_strided_slice %164 {offsets = [8, 0], sizes = [2, 64], strides = [1, 1]} : vector<16x64xf32> to vector<2x64xf32>
    %cst_183 = arith.constant dense<0xFF800000> : vector<64xf32>
    %190 = vector.multi_reduction <maximumf>, %189, %cst_183 [0] : vector<2x64xf32> to vector<64xf32>
    %191 = vector.shape_cast %190 : vector<64xf32> to vector<1x64xf32>
    %c0_184 = arith.constant 0 : index
    %c4_185 = arith.constant 4 : index
    %c0_186 = arith.constant 0 : index
    %192 = vector.load %arg7[%c0_184, %c4_185, %c0_186] : memref<2x8x64xf32, #tpu.memory_space<vmem>>, vector<1x1x64xf32>
    %193 = vector.shape_cast %192 : vector<1x1x64xf32> to vector<1x64xf32>
    %194 = vector.shape_cast %191 : vector<1x64xf32> to vector<1x1x64xf32>
    tpu.vector_store %arg7[%c0_184, %c4_185, %c0_186], %194 {strides = array<i32>} : memref<2x8x64xf32, #tpu.memory_space<vmem>>, vector<1x1x64xf32>,
    %195 = vector.extract_strided_slice %164 {offsets = [10, 0], sizes = [2, 64], strides = [1, 1]} : vector<16x64xf32> to vector<2x64xf32>
    %cst_187 = arith.constant dense<0xFF800000> : vector<64xf32>
    %196 = vector.multi_reduction <maximumf>, %195, %cst_187 [0] : vector<2x64xf32> to vector<64xf32>
    %197 = vector.shape_cast %196 : vector<64xf32> to vector<1x64xf32>
    %c0_188 = arith.constant 0 : index
    %c5_189 = arith.constant 5 : index
    %c0_190 = arith.constant 0 : index
    %198 = vector.load %arg7[%c0_188, %c5_189, %c0_190] : memref<2x8x64xf32, #tpu.memory_space<vmem>>, vector<1x1x64xf32>
    %199 = vector.shape_cast %198 : vector<1x1x64xf32> to vector<1x64xf32>
    %200 = vector.shape_cast %197 : vector<1x64xf32> to vector<1x1x64xf32>
    tpu.vector_store %arg7[%c0_188, %c5_189, %c0_190], %200 {strides = array<i32>} : memref<2x8x64xf32, #tpu.memory_space<vmem>>, vector<1x1x64xf32>,
    %201 = vector.extract_strided_slice %164 {offsets = [12, 0], sizes = [2, 64], strides = [1, 1]} : vector<16x64xf32> to vector<2x64xf32>
    %cst_191 = arith.constant dense<0xFF800000> : vector<64xf32>
    %202 = vector.multi_reduction <maximumf>, %201, %cst_191 [0] : vector<2x64xf32> to vector<64xf32>
    %203 = vector.shape_cast %202 : vector<64xf32> to vector<1x64xf32>
    %c0_192 = arith.constant 0 : index
    %c6_193 = arith.constant 6 : index
    %c0_194 = arith.constant 0 : index
    %204 = vector.load %arg7[%c0_192, %c6_193, %c0_194] : memref<2x8x64xf32, #tpu.memory_space<vmem>>, vector<1x1x64xf32>
    %205 = vector.shape_cast %204 : vector<1x1x64xf32> to vector<1x64xf32>
    %206 = vector.shape_cast %203 : vector<1x64xf32> to vector<1x1x64xf32>
    tpu.vector_store %arg7[%c0_192, %c6_193, %c0_194], %206 {strides = array<i32>} : memref<2x8x64xf32, #tpu.memory_space<vmem>>, vector<1x1x64xf32>,
    %207 = vector.extract_strided_slice %164 {offsets = [14, 0], sizes = [2, 64], strides = [1, 1]} : vector<16x64xf32> to vector<2x64xf32>
    %cst_195 = arith.constant dense<0xFF800000> : vector<64xf32>
    %208 = vector.multi_reduction <maximumf>, %207, %cst_195 [0] : vector<2x64xf32> to vector<64xf32>
    %209 = vector.shape_cast %208 : vector<64xf32> to vector<1x64xf32>
    %c0_196 = arith.constant 0 : index
    %c7_197 = arith.constant 7 : index
    %c0_198 = arith.constant 0 : index
    %210 = vector.load %arg7[%c0_196, %c7_197, %c0_198] : memref<2x8x64xf32, #tpu.memory_space<vmem>>, vector<1x1x64xf32>
    %211 = vector.shape_cast %210 : vector<1x1x64xf32> to vector<1x64xf32>
    %212 = vector.shape_cast %209 : vector<1x64xf32> to vector<1x1x64xf32>
    tpu.vector_store %arg7[%c0_196, %c7_197, %c0_198], %212 {strides = array<i32>} : memref<2x8x64xf32, #tpu.memory_space<vmem>>, vector<1x1x64xf32>,
    %213 = vector.extract_strided_slice %120 {offsets = [1, 0, 0], sizes = [1, 16, 128], strides = [1, 1, 1]} : vector<2x16x128xf32> to vector<1x16x128xf32>
    %214 = vector.shape_cast %213 : vector<1x16x128xf32> to vector<16x128xf32>
    %215 = vector.broadcast %150 : vector<1x128xf32> to vector<16x128xf32>
    %216 = arith.mulf %214, %215 : vector<16x128xf32>
    %217 = vector.broadcast %152 : vector<1x128xf32> to vector<16x128xf32>
    %218 = arith.addf %216, %217 : vector<16x128xf32>
    %cst_199 = arith.constant 0.000000e+00 : f32
    %219 = vector.broadcast %cst_199 : f32 to vector<16x128xf32>
    %220 = arith.maximumf %218, %219 : vector<16x128xf32>
    %c120_i32_200 = arith.constant 120 : i32
    %221 = tpu.dynamic_rotate %220 by %c120_i32_200 dim 1 : vector<16x128xf32>, i32 -> vector<16x128xf32>
    %222 = arith.maximumf %220, %221 : vector<16x128xf32>
    %c0_201 = arith.constant 0 : index
    %c0_202 = arith.constant 0 : index
    %223 = vector.load %arg6[%c0_201, %c0_202] : memref<128x64xf32, #tpu.memory_space<vmem>>, vector<128x64xf32>
    %cst_203 = arith.constant dense<0.000000e+00> : vector<16x64xf32>
    %224 = tpu.matmul %222, %223, %cst_203 {dimension_numbers = #tpu.dot_dimension_numbers<[1], [0], [0], [1], [0, 0, 1, 1], [], []>} : vector<16x128xf32>, vector<128x64xf32>, vector<16x64xf32> -> vector<16x64xf32>
    %225 = vector.extract_strided_slice %224 {offsets = [0, 0], sizes = [2, 64], strides = [1, 1]} : vector<16x64xf32> to vector<2x64xf32>
    %cst_204 = arith.constant dense<0xFF800000> : vector<64xf32>
    %226 = vector.multi_reduction <maximumf>, %225, %cst_204 [0] : vector<2x64xf32> to vector<64xf32>
    %227 = vector.shape_cast %226 : vector<64xf32> to vector<1x64xf32>
    %c1_205 = arith.constant 1 : index
    %c0_206 = arith.constant 0 : index
    %c0_207 = arith.constant 0 : index
    %228 = vector.load %arg7[%c1_205, %c0_206, %c0_207] : memref<2x8x64xf32, #tpu.memory_space<vmem>>, vector<1x1x64xf32>
    %229 = vector.shape_cast %228 : vector<1x1x64xf32> to vector<1x64xf32>
    %230 = vector.shape_cast %227 : vector<1x64xf32> to vector<1x1x64xf32>
    tpu.vector_store %arg7[%c1_205, %c0_206, %c0_207], %230 {strides = array<i32>} : memref<2x8x64xf32, #tpu.memory_space<vmem>>, vector<1x1x64xf32>,
    %231 = vector.extract_strided_slice %224 {offsets = [2, 0], sizes = [2, 64], strides = [1, 1]} : vector<16x64xf32> to vector<2x64xf32>
    %cst_208 = arith.constant dense<0xFF800000> : vector<64xf32>
    %232 = vector.multi_reduction <maximumf>, %231, %cst_208 [0] : vector<2x64xf32> to vector<64xf32>
    %233 = vector.shape_cast %232 : vector<64xf32> to vector<1x64xf32>
    %c1_209 = arith.constant 1 : index
    %c1_210 = arith.constant 1 : index
    %c0_211 = arith.constant 0 : index
    %234 = vector.load %arg7[%c1_209, %c1_210, %c0_211] : memref<2x8x64xf32, #tpu.memory_space<vmem>>, vector<1x1x64xf32>
    %235 = vector.shape_cast %234 : vector<1x1x64xf32> to vector<1x64xf32>
    %236 = vector.shape_cast %233 : vector<1x64xf32> to vector<1x1x64xf32>
    tpu.vector_store %arg7[%c1_209, %c1_210, %c0_211], %236 {strides = array<i32>} : memref<2x8x64xf32, #tpu.memory_space<vmem>>, vector<1x1x64xf32>,
    %237 = vector.extract_strided_slice %224 {offsets = [4, 0], sizes = [2, 64], strides = [1, 1]} : vector<16x64xf32> to vector<2x64xf32>
    %cst_212 = arith.constant dense<0xFF800000> : vector<64xf32>
    %238 = vector.multi_reduction <maximumf>, %237, %cst_212 [0] : vector<2x64xf32> to vector<64xf32>
    %239 = vector.shape_cast %238 : vector<64xf32> to vector<1x64xf32>
    %c1_213 = arith.constant 1 : index
    %c2_214 = arith.constant 2 : index
    %c0_215 = arith.constant 0 : index
    %240 = vector.load %arg7[%c1_213, %c2_214, %c0_215] : memref<2x8x64xf32, #tpu.memory_space<vmem>>, vector<1x1x64xf32>
    %241 = vector.shape_cast %240 : vector<1x1x64xf32> to vector<1x64xf32>
    %242 = vector.shape_cast %239 : vector<1x64xf32> to vector<1x1x64xf32>
    tpu.vector_store %arg7[%c1_213, %c2_214, %c0_215], %242 {strides = array<i32>} : memref<2x8x64xf32, #tpu.memory_space<vmem>>, vector<1x1x64xf32>,
    %243 = vector.extract_strided_slice %224 {offsets = [6, 0], sizes = [2, 64], strides = [1, 1]} : vector<16x64xf32> to vector<2x64xf32>
    %cst_216 = arith.constant dense<0xFF800000> : vector<64xf32>
    %244 = vector.multi_reduction <maximumf>, %243, %cst_216 [0] : vector<2x64xf32> to vector<64xf32>
    %245 = vector.shape_cast %244 : vector<64xf32> to vector<1x64xf32>
    %c1_217 = arith.constant 1 : index
    %c3_218 = arith.constant 3 : index
    %c0_219 = arith.constant 0 : index
    %246 = vector.load %arg7[%c1_217, %c3_218, %c0_219] : memref<2x8x64xf32, #tpu.memory_space<vmem>>, vector<1x1x64xf32>
    %247 = vector.shape_cast %246 : vector<1x1x64xf32> to vector<1x64xf32>
    %248 = vector.shape_cast %245 : vector<1x64xf32> to vector<1x1x64xf32>
    tpu.vector_store %arg7[%c1_217, %c3_218, %c0_219], %248 {strides = array<i32>} : memref<2x8x64xf32, #tpu.memory_space<vmem>>, vector<1x1x64xf32>,
    %249 = vector.extract_strided_slice %224 {offsets = [8, 0], sizes = [2, 64], strides = [1, 1]} : vector<16x64xf32> to vector<2x64xf32>
    %cst_220 = arith.constant dense<0xFF800000> : vector<64xf32>
    %250 = vector.multi_reduction <maximumf>, %249, %cst_220 [0] : vector<2x64xf32> to vector<64xf32>
    %251 = vector.shape_cast %250 : vector<64xf32> to vector<1x64xf32>
    %c1_221 = arith.constant 1 : index
    %c4_222 = arith.constant 4 : index
    %c0_223 = arith.constant 0 : index
    %252 = vector.load %arg7[%c1_221, %c4_222, %c0_223] : memref<2x8x64xf32, #tpu.memory_space<vmem>>, vector<1x1x64xf32>
    %253 = vector.shape_cast %252 : vector<1x1x64xf32> to vector<1x64xf32>
    %254 = vector.shape_cast %251 : vector<1x64xf32> to vector<1x1x64xf32>
    tpu.vector_store %arg7[%c1_221, %c4_222, %c0_223], %254 {strides = array<i32>} : memref<2x8x64xf32, #tpu.memory_space<vmem>>, vector<1x1x64xf32>,
    %255 = vector.extract_strided_slice %224 {offsets = [10, 0], sizes = [2, 64], strides = [1, 1]} : vector<16x64xf32> to vector<2x64xf32>
    %cst_224 = arith.constant dense<0xFF800000> : vector<64xf32>
    %256 = vector.multi_reduction <maximumf>, %255, %cst_224 [0] : vector<2x64xf32> to vector<64xf32>
    %257 = vector.shape_cast %256 : vector<64xf32> to vector<1x64xf32>
    %c1_225 = arith.constant 1 : index
    %c5_226 = arith.constant 5 : index
    %c0_227 = arith.constant 0 : index
    %258 = vector.load %arg7[%c1_225, %c5_226, %c0_227] : memref<2x8x64xf32, #tpu.memory_space<vmem>>, vector<1x1x64xf32>
    %259 = vector.shape_cast %258 : vector<1x1x64xf32> to vector<1x64xf32>
    %260 = vector.shape_cast %257 : vector<1x64xf32> to vector<1x1x64xf32>
    tpu.vector_store %arg7[%c1_225, %c5_226, %c0_227], %260 {strides = array<i32>} : memref<2x8x64xf32, #tpu.memory_space<vmem>>, vector<1x1x64xf32>,
    %261 = vector.extract_strided_slice %224 {offsets = [12, 0], sizes = [2, 64], strides = [1, 1]} : vector<16x64xf32> to vector<2x64xf32>
    %cst_228 = arith.constant dense<0xFF800000> : vector<64xf32>
    %262 = vector.multi_reduction <maximumf>, %261, %cst_228 [0] : vector<2x64xf32> to vector<64xf32>
    %263 = vector.shape_cast %262 : vector<64xf32> to vector<1x64xf32>
    %c1_229 = arith.constant 1 : index
    %c6_230 = arith.constant 6 : index
    %c0_231 = arith.constant 0 : index
    %264 = vector.load %arg7[%c1_229, %c6_230, %c0_231] : memref<2x8x64xf32, #tpu.memory_space<vmem>>, vector<1x1x64xf32>
    %265 = vector.shape_cast %264 : vector<1x1x64xf32> to vector<1x64xf32>
    %266 = vector.shape_cast %263 : vector<1x64xf32> to vector<1x1x64xf32>
    tpu.vector_store %arg7[%c1_229, %c6_230, %c0_231], %266 {strides = array<i32>} : memref<2x8x64xf32, #tpu.memory_space<vmem>>, vector<1x1x64xf32>,
    %267 = vector.extract_strided_slice %224 {offsets = [14, 0], sizes = [2, 64], strides = [1, 1]} : vector<16x64xf32> to vector<2x64xf32>
    %cst_232 = arith.constant dense<0xFF800000> : vector<64xf32>
    %268 = vector.multi_reduction <maximumf>, %267, %cst_232 [0] : vector<2x64xf32> to vector<64xf32>
    %269 = vector.shape_cast %268 : vector<64xf32> to vector<1x64xf32>
    %c1_233 = arith.constant 1 : index
    %c7_234 = arith.constant 7 : index
    %c0_235 = arith.constant 0 : index
    %270 = vector.load %arg7[%c1_233, %c7_234, %c0_235] : memref<2x8x64xf32, #tpu.memory_space<vmem>>, vector<1x1x64xf32>
    %271 = vector.shape_cast %270 : vector<1x1x64xf32> to vector<1x64xf32>
    %272 = vector.shape_cast %269 : vector<1x64xf32> to vector<1x1x64xf32>
    tpu.vector_store %arg7[%c1_233, %c7_234, %c0_235], %272 {strides = array<i32>} : memref<2x8x64xf32, #tpu.memory_space<vmem>>, vector<1x1x64xf32>,
    return
  }
}

</mosaic_0001>

<bundles_post_ra>
// kernel: forward.1
= control target key start
LH: loop header
LB: loop body
LE: loop exit
PB: predicated region body
PF: predicated region fallthrough
CT: control target
= control target key end

     0   :  { %vm26_vm0 = vcmask 588800   ;;  %vm29_vm1 = vcmask 582656   ;;  %v4636_v2 = vmov 0.0   ;;  %s3475_s28 = smov 4   ;;  %vm54_vm2 = vcmask 556064   ;;  %s3477_s22 = smov 124   ;;  %s4628_s0 = inlined_call_operand.vmem [shape: f32[2,16,64], index: 0, kind: input, shape index: {}]   ;;  %s4629_s1 = inlined_call_operand.vmem [shape: f32[9,64,128], index: 1, kind: input, shape index: {}]   ;;  %s4630_s4 = inlined_call_operand.vmem [shape: f32[128,8], index: 4, kind: input, shape index: {}]   ;;  %s4631_s5 = inlined_call_operand.vmem [shape: f32[8,128], index: 5, kind: input, shape index: {}]   ;;  %s4632_s2 = inlined_call_operand.vmem [shape: f32[1,8], index: 2, kind: input, shape index: {}]   ;;  %s4633_s3 = inlined_call_operand.vmem [shape: f32[1,8], index: 3, kind: input, shape index: {}]   ;;  %s4634_s6 = inlined_call_operand.vmem [shape: f32[128,64], index: 6, kind: input, shape index: {}]   ;;  %s4635_s7 = inlined_call_operand.vmem [shape: f32[2,8,64], index: 7, kind: output, shape index: {}]  }
   0x1   :  { %v34_v0 = vld [vmem:[%s4628_s0] sm:$0xff]  ;;  %v36_v1 = vld [vmem:[%s4628_s0 + $0x10] sm:$0xff]  ;;  %27 = vst.msk [vmem:[#allocation2] sm:$0xff] %vm26_vm0, %v4636_v2  ;;  %28 = vst.msk [vmem:[#allocation2 + $0x8] sm:$0xff] %vm26_vm0, %v4636_v2  ;;  %vm84_vm3 = vcmask 523264   ;;  %vm3478_vm4 = vmmov 0  }
   0x2   :  { %31 = vst.msk [vmem:[#allocation2 + $0x18] sm:$0xff] %vm26_vm0, %v4636_v2  ;;  %32 = vst.msk [vmem:[#allocation2 + $0x20] sm:$0xff] %vm26_vm0, %v4636_v2  ;;  %42 = vrot.lane.b32.xlu0 %v34_v0, %s3475_s28  ;;  %46 = vrot.lane.b32.xlu1 %v36_v1, %s3475_s28  ;;  %v3534_v3 = vld [vmem:[%s4629_s1 + $0x38] sm:$0xff]  ;;  %v35_v4 = vld [vmem:[%s4628_s0 + $0x8] sm:$0xff]  ;;  %vm1837_vm5 = vcmask 64512   ;;  %vm2286_vm6 = vcmask 517120  }
   0x3   :  { %30 = vst.msk [vmem:[#allocation2 + $0x10] sm:$0x3] %vm29_vm1, %v4636_v2  ;;  %33 = vst.msk [vmem:[#allocation2 + $0x28] sm:$0x3] %vm29_vm1, %v4636_v2  ;;  %2979 = vmatprep.subr.mxu1 %v3534_v3  ;;  %v3543_v5 = vld [vmem:[%s4629_s1 + $0x30] sm:$0xff]  ;;  %v3549_v6 = vld [vmem:[%s4629_s1 + $0x28] sm:$0xff] }
   0x4   :  { %2980 = vmatpush3.msra.mxu1 %v3534_v3  ;;  %v3556_v7 = vld [vmem:[%s4629_s1 + $0x20] sm:$0xff]  ;;  %v37_v8 = vld [vmem:[%s4628_s0 + $0x18] sm:$0xff]  ;;  %v3573_v10 = vld [vmem:[%s4629_s1 + $0x10] sm:$0xff]  ;;  %s3476_s0 = smov 120   ;;  %vm2296_vm7 = vcmask 519170   ;;  %vm2305_vm8 = vcmask 521220  }
   0x5   :  { %2981 = vmatprep.subr.mxu1 %v3543_v5  ;;  %v3566_v9 = vld [vmem:[%s4629_s1 + $0x18] sm:$0xff]  ;;  %v3580_v11 = vld [vmem:[%s4629_s1 + $0x8] sm:$0xff]  ;;  %v3587_v12 = vld [vmem:[%s4629_s1] sm:$0xff]  ;;  %vm2314_vm9 = vcmask 523270   ;;  %vm2294_vm10 = vcmask 516096  }
   0x6   :  { %44 = vrot.lane.b32.xlu0 %v35_v4, %s3475_s28  ;;  %2982 = vmatpush3.msra.mxu1 %v3543_v5  ;;  %v3594_v13 = vld [vmem:[%s4629_s1 + $0xf8] sm:$0xff]  ;;  %v3607_v15 = vld [vmem:[%s4629_s1 + $0x70] sm:$0xff]  ;;  %v3614_v16 = vld [vmem:[%s4629_s1 + $0x68] sm:$0xff] }
   0x7   :  { %2983 = vmatprep.subr.mxu1 %v3549_v6  ;;  %v3602_v14 = vld [vmem:[%s4629_s1 + $0x78] sm:$0xff]  ;;  %v3621_v17 = vld [vmem:[%s4629_s1 + $0x60] sm:$0xff]  ;;  %v3635_v19 = vld [vmem:[%s4629_s1 + $0x50] sm:$0xff] }
   0x8   :  { %2984 = vmatpush3.msra.mxu1 %v3549_v6  ;;  %2960 = vmatprep.subr.mxu0 %v3602_v14  ;;  %v3628_v18 = vld [vmem:[%s4629_s1 + $0x58] sm:$0xff]  ;;  %v3642_v20 = vld [vmem:[%s4629_s1 + $0x48] sm:$0xff]  ;;  %v3651_v21 = vld [vmem:[%s4629_s1 + $0x40] sm:$0xff] }
   0x9   :  { %2985 = vmatprep.subr.mxu1 %v3556_v7  ;;  %2961 = vmatpush3.msra.mxu0 %v3602_v14  ;;  %v3656_v22 = vld [vmem:[%s4629_s1 + $0xb8] sm:$0xff]  ;;  %v3673_v30 = vld [vmem:[%s4629_s1 + $0xf0] sm:$0xff]  ;;  %v3681_v31 = vld [vmem:[%s4629_s1 + $0xe8] sm:$0xff] }
   0xa   :  { %48 = vrot.lane.b32.xlu0 %v37_v8, %s3475_s28  ;;  %2986 = vmatpush3.msra.mxu1 %v3556_v7  ;;  %v3689_v32 = vld [vmem:[%s4629_s1 + $0xe0] sm:$0xff]  ;;  %v3697_v33 = vld [vmem:[%s4629_s1 + $0xd8] sm:$0xff]  ;;  %v3708_v36 = vld [vmem:[%s4629_s1 + $0xd0] sm:$0xff] }
   0xb   :  { %2987 = vmatprep.subr.mxu1 %v3566_v9  ;;  %2962 = vmatprep.subr.mxu0 %v3607_v15  ;;  %v3716_v37 = vld [vmem:[%s4629_s1 + $0xc8] sm:$0xff]  ;;  %v3725_v38 = vld [vmem:[%s4629_s1 + $0xc0] sm:$0xff]  ;;  %v3736_v40 = vld [vmem:[%s4629_s1 + $0x178] sm:$0xff] }
   0xc   :  { %2988 = vmatpush3.msra.mxu1 %v3566_v9  ;;  %2963 = vmatpush3.msra.mxu0 %v3607_v15  ;;  %v3749_v42 = vld [vmem:[%s4629_s1 + $0x170] sm:$0xff]  ;;  %v3756_v43 = vld [vmem:[%s4629_s1 + $0x168] sm:$0xff]  ;;  %v3769_v45 = vld [vmem:[%s4629_s1 + $0x160] sm:$0xff] }
   0xd   :  { %2989 = vmatprep.subr.mxu1 %v3573_v10  ;;  %2964 = vmatprep.subr.mxu0 %v3614_v16  ;;  %v3778_v47 = vld [vmem:[%s4629_s1 + $0x158] sm:$0xff]  ;;  %v3789_v48 = vld [vmem:[%s4629_s1 + $0x150] sm:$0xff]  ;;  %v3796_v49 = vld [vmem:[%s4629_s1 + $0x148] sm:$0xff] }
   0xe   :  { %2990 = vmatpush3.msra.mxu1 %v3573_v10  ;;  %2965 = vmatpush3.msra.mxu0 %v3614_v16  ;;  %v3809_v51 = vld [vmem:[%s4629_s1 + $0x140] sm:$0xff]  ;;  %v3818_v53 = vld [vmem:[%s4629_s1 + $0x1f8] sm:$0xff]  ;;  %v3841_v59 = vld [vmem:[%s4629_s1 + $0xb0] sm:$0xff] }
   0xf   :  { %2991 = vmatprep.subr.mxu1 %v3580_v11  ;;  %2966 = vmatprep.subr.mxu0 %v3621_v17  ;;  %v3849_v60 = vld [vmem:[%s4629_s1 + $0xa8] sm:$0xff]  ;;  %v3856_v62 = vld [vmem:[%s4629_s1 + $0xa0] sm:$0xff]  ;;  %v3864_v0 = vld [vmem:[%s4629_s1 + $0x98] sm:$0xff] }
  0x10   :  { %2992 = vmatpush3.msra.mxu1 %v3580_v11  ;;  %2967 = vmatpush3.msra.mxu0 %v3621_v17  ;;  %v3871_v1 = vld [vmem:[%s4629_s1 + $0x90] sm:$0xff]  ;;  %v3880_v8 = vld [vmem:[%s4629_s1 + $0x88] sm:$0xff] }
  0x11   :  { %2993 = vmatprep.subr.mxu1 %v3587_v12  ;;  %2968 = vmatprep.subr.mxu0 %v3628_v18  ;;  %v3988_v2 = vld [vmem:[%s4629_s1 + $0x108] sm:$0xff] }
  0x12   :  { %2994 = vmatpush3.msra.mxu1 %v3587_v12  ;;  %2969 = vmatpush3.msra.mxu0 %v3628_v18 }
  0x13   :  { %3017 = vmatprep.subr.mxu1 %v3594_v13  ;;  %2970 = vmatprep.subr.mxu0 %v3635_v19 }
  0x14   :  { %2971 = vmatpush3.msra.mxu0 %v3635_v19 }
  0x15   :  { %2972 = vmatprep.subr.mxu0 %v3642_v20 }
  0x16   :  { %2973 = vmatpush3.msra.mxu0 %v3642_v20 }
  0x17   :  { %2974 = vmatprep.subr.mxu0 %v3651_v21 }
  0x18   :  { %2975 = vmatpush3.msra.mxu0 %v3651_v21 }
  0x19   :  { %2998 = vmatprep.subr.mxu0 %v3656_v22 }
  0x74   :  { %v43_v23 = vpop.permute.xlu0 %42  ;;  %v47_v24 = vpop.permute.xlu1 %46 }
  0x75   :  { %55 = vst.msk [vmem:[#allocation2 + $0x1] sm:$0xff] %vm54_vm2, %v43_v23  ;;  %57 = vst.msk [vmem:[#allocation2 + $0x19] sm:$0xff] %vm54_vm2, %v47_v24  ;;  %v3887_v23 = vld [vmem:[%s4629_s1 + $0x80] sm:$0xff] }
  0x78   :  { %v45_v25 = vpop.permute.xlu0 %44 }
  0x79   :  { %56 = vst.msk [vmem:[#allocation2 + $0x9] sm:$0xff] %vm54_vm2, %v45_v25  ;;  %v3893_v25 = vld [vmem:[%s4629_s1 + $0x1f0] sm:$0xff] }
  0x7c   :  { %v59_v26 = vld [vmem:[#allocation2] sm:$0xff]  ;;  %v49_v27 = vpop.permute.xlu0 %48  ;;  %v3729_v39 = vld [vmem:[#allocation2 + $0x18] sm:$0xff] }
  0x7d   :  { %252 = vrot.lane.b32.xlu0 %v59_v26, %s3476_s0  ;;  %80 = vrot.lane.b32.xlu1 %v59_v26, %s3477_s22  ;;  %58 = vst.msk [vmem:[#allocation2 + $0x21] sm:$0xff] %vm54_vm2, %v49_v27  ;;  %v337_v28 = vld [vmem:[#allocation2 + $0x1] sm:$0xff]  ;;  %v3763_v44 = vld [vmem:[#allocation2 + $0x19] sm:$0xff] }
  0x7e   :  { %2995 = vmatprep.mubr.msk.f32.mxu1 %vm84_vm3, %v59_v26  ;;  %v3902_v27 = vld [vmem:[%s4629_s1 + $0x138] sm:$0xff] }
  0x80   :  { %v60_v29 = vld [vmem:[#allocation2 + $0x8] sm:$0xff] }
  0x81   :  { %440 = vrot.lane.b32.xlu0 %v337_v28, %s3477_s22  ;;  %82 = vrot.lane.b32.xlu1 %v60_v29, %s3477_s22  ;;  %v3700_v34 = vld [vmem:[#allocation2 + $0x2] sm:$0xff]  ;;  %v3739_v41 = vld [vmem:[#allocation2 + $0xa] sm:$0xff] }
  0x82   :  { %2996 = vmatmul.mubr.msk.f32.vlgmr.msra.gmra.mxu1 %vm84_vm3, %v60_v29  ;;  %v338_v35 = vld [vmem:[#allocation2 + $0x9] sm:$0xff] }
  0x83   :  { %3018 = vmatpush3.msra.mxu1 %v3594_v13  ;;  %3033 = vmatprep.mubr.msk.f32.mxu1 %vm84_vm3, %v337_v28 }
  0x84   :  { %3019 = vmatprep.subr.mxu1 %v3673_v30  ;;  %v3771_v46 = vld [vmem:[#allocation2 + $0x20] sm:$0xff] }
  0x85   :  { %3020 = vmatpush3.msra.mxu1 %v3673_v30  ;;  %534 = vrot.lane.b32.xlu0 %v337_v28, %s3476_s0  ;;  %v3803_v50 = vld [vmem:[#allocation2 + $0x1a] sm:$0xff]  ;;  %v3831_v54 = vld [vmem:[#allocation2 + $0x22] sm:$0xff] }
  0x86   :  { %3021 = vmatprep.subr.mxu1 %v3681_v31  ;;  %254 = vrot.lane.b32.xlu1 %v60_v29, %s3476_s0  ;;  %v3811_v52 = vld [vmem:[#allocation2 + $0x21] sm:$0xff]  ;;  %v3918_v29 = vld [vmem:[%s4629_s1 + $0x130] sm:$0xff] }
  0x87   :  { %3022 = vmatpush3.msra.mxu1 %v3681_v31  ;;  %v3909_v28 = vld [vmem:[%s4629_s1 + $0x1e8] sm:$0xff] }
  0x88   :  { %3023 = vmatprep.subr.mxu1 %v3689_v32 }
  0x89   :  { %3024 = vmatpush3.msra.mxu1 %v3689_v32  ;;  %722 = vrot.lane.b32.xlu0 %v3700_v34, %s3477_s22 }
  0x8a   :  { %3025 = vmatprep.subr.mxu1 %v3697_v33  ;;  %442 = vrot.lane.b32.xlu1 %v338_v35, %s3477_s22 }
  0x8b   :  { %3026 = vmatpush3.msra.mxu1 %v3697_v33 }
  0x8c   :  { %3027 = vmatprep.subr.mxu1 %v3708_v36 }
  0x8d   :  { %3028 = vmatpush3.msra.mxu1 %v3708_v36  ;;  %816 = vrot.lane.b32.xlu0 %v3700_v34, %s3476_s0 }
  0x8e   :  { %3029 = vmatprep.subr.mxu1 %v3716_v37  ;;  %536 = vrot.lane.b32.xlu1 %v338_v35, %s3476_s0 }
  0x8f   :  { %3030 = vmatpush3.msra.mxu1 %v3716_v37 }
  0x90   :  { %3031 = vmatprep.subr.mxu1 %v3725_v38 }
  0x91   :  { %3032 = vmatpush3.msra.mxu1 %v3725_v38  ;;  %924 = vrot.lane.b32.xlu0 %v3729_v39, %s3477_s22 }
  0x92   :  { %3034 = vmatmul.mubr.msk.f32.vlgmr.msra.gmra.mxu1 %vm84_vm3, %v338_v35  ;;  %724 = vrot.lane.b32.xlu1 %v3739_v41, %s3477_s22  ;;  %v3923_v35 = vld [vmem:[%s4629_s1 + $0x1e0] sm:$0xff] }
  0x93   :  { %3055 = vmatprep.subr.mxu1 %v3736_v40  ;;  %4648 = vst [vmem:[#allocation4_spill] sm:$0xff] %v3923_v35 }
  0x94   :  { %3056 = vmatpush3.msra.mxu1 %v3736_v40 }
  0x95   :  { %1094 = vrot.lane.b32.xlu0 %v3729_v39, %s3476_s0  ;;  %3057 = vmatprep.subr.mxu1 %v3749_v42 }
  0x96   :  { %818 = vrot.lane.b32.xlu1 %v3739_v41, %s3476_s0  ;;  %3058 = vmatpush3.msra.mxu1 %v3749_v42 }
  0x97   :  { %3059 = vmatprep.subr.mxu1 %v3756_v43 }
  0x98   :  { %3060 = vmatpush3.msra.mxu1 %v3756_v43 }
  0x99   :  { %1280 = vrot.lane.b32.xlu0 %v3763_v44, %s3477_s22  ;;  %3061 = vmatprep.subr.mxu1 %v3769_v45 }
  0x9a   :  { %926 = vrot.lane.b32.xlu1 %v3771_v46, %s3477_s22  ;;  %3062 = vmatpush3.msra.mxu1 %v3769_v45 }
  0x9b   :  { %3063 = vmatprep.subr.mxu1 %v3778_v47 }
  0x9c   :  { %3064 = vmatpush3.msra.mxu1 %v3778_v47 }
  0x9d   :  { %1373 = vrot.lane.b32.xlu0 %v3763_v44, %s3476_s0  ;;  %3065 = vmatprep.subr.mxu1 %v3789_v48 }
  0x9e   :  { %1096 = vrot.lane.b32.xlu1 %v3771_v46, %s3476_s0  ;;  %3066 = vmatpush3.msra.mxu1 %v3789_v48 }
  0x9f   :  { %3067 = vmatprep.subr.mxu1 %v3796_v49 }
  0xa0   :  { %3068 = vmatpush3.msra.mxu1 %v3796_v49 }
  0xa1   :  { %1559 = vrot.lane.b32.xlu0 %v3803_v50, %s3477_s22  ;;  %3069 = vmatprep.subr.mxu1 %v3809_v51 }
  0xa2   :  { %1282 = vrot.lane.b32.xlu1 %v3811_v52, %s3477_s22  ;;  %3070 = vmatpush3.msra.mxu1 %v3809_v51 }
  0xa3   :  { %3093 = vmatprep.subr.mxu1 %v3818_v53 }
  0xa5   :  { %1652 = vrot.lane.b32.xlu0 %v3803_v50, %s3476_s0 }
  0xa6   :  { %1375 = vrot.lane.b32.xlu1 %v3811_v52, %s3476_s0 }
  0xaa   :  { %1561 = vrot.lane.b32.xlu1 %v3831_v54, %s3477_s22 }
  0xae   :  { %1654 = vrot.lane.b32.xlu1 %v3831_v54, %s3476_s0 }
  0xef   :  { %v81_v55 = vpop.permute.xlu1 %80  ;;  %v253_v56 = vpop.permute.xlu0 %252 }
  0xf0   :  { %2976 = vmatprep.mubr.msk.f32.mxu0 %vm84_vm3, %v81_v55  ;;  %v3932_v55 = vld [vmem:[%s4629_s1 + $0x128] sm:$0xff] }
  0xf3   :  { %v83_v57 = vpop.permute.xlu1 %82  ;;  %v441_v58 = vpop.permute.xlu0 %440 }
  0xf4   :  { %2977 = vmatmul.mubr.msk.f32.vlgmr.msra.gmra.mxu0 %vm84_vm3, %v83_v57  ;;  %v3946_v57 = vld [vmem:[%s4629_s1 + $0x120] sm:$0xff] }
  0xf5   :  { %2999 = vmatpush3.msra.mxu0 %v3656_v22  ;;  %3014 = vmatprep.mubr.msk.f32.mxu0 %vm84_vm3, %v253_v56  ;;  %v3937_v56 = vld [vmem:[%s4629_s1 + $0x1d8] sm:$0xff] }
  0xf6   :  { %3000 = vmatprep.subr.mxu0 %v3841_v59  ;;  %4649 = vst [vmem:[#allocation5_spill] sm:$0xff] %v3937_v56 }
  0xf7   :  { %3001 = vmatpush3.msra.mxu0 %v3841_v59  ;;  %v535_v61 = vpop.permute.xlu0 %534 }
  0xf8   :  { %3002 = vmatprep.subr.mxu0 %v3849_v60  ;;  %v255_v63 = vpop.permute.xlu1 %254  ;;  %3071 = vmatprep.mubr.msk.f32.mxu1 %vm84_vm3, %v535_v61  ;;  %v3960_v61 = vld [vmem:[%s4629_s1 + $0x118] sm:$0xff] }
  0xf9   :  { %3003 = vmatpush3.msra.mxu0 %v3849_v60 }
  0xfa   :  { %3004 = vmatprep.subr.mxu0 %v3856_v62 }
  0xfb   :  { %3005 = vmatpush3.msra.mxu0 %v3856_v62  ;;  %v723_v26 = vpop.permute.xlu0 %722 }
  0xfc   :  { %3006 = vmatprep.subr.mxu0 %v3864_v0  ;;  %v3874_v4 = vpop.permute.xlu1 %442 }
  0xfd   :  { %3007 = vmatpush3.msra.mxu0 %v3864_v0 }
  0xfe   :  { %3008 = vmatprep.subr.mxu0 %v3871_v1 }
  0xff   :  { %3009 = vmatpush3.msra.mxu0 %v3871_v1 }
 0x100   :  { %3010 = vmatprep.subr.mxu0 %v3880_v8  ;;  %v537_v24 = vpop.permute.xlu1 %536 }
 0x101   :  { %3011 = vmatpush3.msra.mxu0 %v3880_v8  ;;  %3072 = vmatmul.mubr.msk.f32.vlgmr.msra.gmra.mxu1 %vm84_vm3, %v537_v24  ;;  %v3974_v24 = vld [vmem:[%s4629_s1 + $0x110] sm:$0xff] }
 0x102   :  { %3094 = vmatpush3.msra.mxu1 %v3818_v53  ;;  %3012 = vmatprep.subr.mxu0 %v3887_v23 }
 0x103   :  { %3095 = vmatprep.subr.mxu1 %v3893_v25  ;;  %3109 = vmatprep.mubr.msk.f32.mxu1 %vm84_vm3, %v723_v26  ;;  %v3979_v26 = vld [vmem:[%s4629_s1 + $0x1c0] sm:$0xff] }
 0x104   :  { %3013 = vmatpush3.msra.mxu0 %v3887_v23  ;;  %3096 = vmatpush3.msra.mxu1 %v3893_v25  ;;  %4652 = vst [vmem:[#allocation8_spill] sm:$0xff] %v3979_v26 }
 0x105   :  { %3036 = vmatprep.subr.mxu0 %v3902_v27  ;;  %3015 = vmatmul.mubr.msk.f32.vlgmr.msra.gmra.mxu0 %vm84_vm3, %v255_v63  ;;  %v3965_v63 = vld [vmem:[%s4629_s1 + $0x1c8] sm:$0xff] }
 0x106   :  { %3097 = vmatprep.subr.mxu1 %v3909_v28  ;;  %3037 = vmatpush3.msra.mxu0 %v3902_v27  ;;  %4651 = vst [vmem:[#allocation7_spill] sm:$0xff] %v3965_v63 }
 0x107   :  { %3052 = vmatprep.mubr.msk.f32.mxu0 %vm84_vm3, %v441_v58  ;;  %3098 = vmatpush3.msra.mxu1 %v3909_v28  ;;  %v3951_v58 = vld [vmem:[%s4629_s1 + $0x1d0] sm:$0xff] }
 0x108   :  { %3038 = vmatprep.subr.mxu0 %v3918_v29  ;;  %3099 = vmatprep.subr.mxu1 %v3923_v35  ;;  %4650 = vst [vmem:[#allocation6_spill] sm:$0xff] %v3951_v58 }
 0x109   :  { %3039 = vmatpush3.msra.mxu0 %v3918_v29  ;;  %3100 = vmatpush3.msra.mxu1 %v3923_v35  ;;  %v4077_v35 = vld [vmem:[%s4629_s1 + $0x180] sm:$0xff] }
 0x10a   :  { %3040 = vmatprep.subr.mxu0 %v3932_v55  ;;  %3101 = vmatprep.subr.mxu1 %v3937_v56 }
 0x10b   :  { %3041 = vmatpush3.msra.mxu0 %v3932_v55  ;;  %3102 = vmatpush3.msra.mxu1 %v3937_v56  ;;  %v3997_v56 = vld [vmem:[%s4629_s1 + $0x100] sm:$0xff] }
 0x10c   :  { %3042 = vmatprep.subr.mxu0 %v3946_v57  ;;  %3103 = vmatprep.subr.mxu1 %v3951_v58 }
 0x10d   :  { %3043 = vmatpush3.msra.mxu0 %v3946_v57  ;;  %3104 = vmatpush3.msra.mxu1 %v3951_v58  ;;  %v725_v58 = vpop.permute.xlu1 %724 }
 0x10e   :  { %3044 = vmatprep.subr.mxu0 %v3960_v61  ;;  %3105 = vmatprep.subr.mxu1 %v3965_v63 }
 0x10f   :  { %3045 = vmatpush3.msra.mxu0 %v3960_v61  ;;  %3106 = vmatpush3.msra.mxu1 %v3965_v63 }
 0x110   :  { %3046 = vmatprep.subr.mxu0 %v3974_v24  ;;  %3107 = vmatprep.subr.mxu1 %v3979_v26 }
 0x111   :  { %3047 = vmatpush3.msra.mxu0 %v3974_v24  ;;  %3108 = vmatpush3.msra.mxu1 %v3979_v26  ;;  %v4008_v26 = vld [vmem:[%s4629_s1 + $0x1b8] sm:$0xff] }
 0x112   :  { %3048 = vmatprep.subr.mxu0 %v3988_v2  ;;  %3110 = vmatmul.mubr.msk.f32.vlgmr.msra.gmra.mxu1 %vm84_vm3, %v725_v58  ;;  %v4050_v58 = vpop.permute.xlu1 %818 }
 0x113   :  { %3131 = vmatprep.subr.mxu1 %v3602_v14  ;;  %3049 = vmatpush3.msra.mxu0 %v3988_v2 }
 0x114   :  { %3132 = vmatpush3.msra.mxu1 %v3602_v14  ;;  %3050 = vmatprep.subr.mxu0 %v3997_v56  ;;  %v4018_v14 = vld [vmem:[%s4629_s1 + $0x1b0] sm:$0xff] }
 0x115   :  { %3133 = vmatprep.subr.mxu1 %v3607_v15  ;;  %3051 = vmatpush3.msra.mxu0 %v3997_v56 }
 0x116   :  { %3134 = vmatpush3.msra.mxu1 %v3607_v15  ;;  %3053 = vmatmul.mubr.msk.f32.vlgmr.msra.gmra.mxu0 %vm84_vm3, %v3874_v4  ;;  %v4028_v15 = vld [vmem:[%s4629_s1 + $0x1a8] sm:$0xff]  ;;  %v4037_v4 = vld [vmem:[%s4629_s1 + $0x1a0] sm:$0xff] }
 0x117   :  { %3074 = vmatprep.subr.mxu0 %v4008_v26  ;;  %3135 = vmatprep.subr.mxu1 %v3614_v16 }
 0x118   :  { %3075 = vmatpush3.msra.mxu0 %v4008_v26  ;;  %3090 = vmatprep.mubr.msk.f32.mxu0 %vm84_vm3, %v3700_v34  ;;  %v817_v34 = vpop.permute.xlu0 %816 }
 0x119   :  { %3136 = vmatpush3.msra.mxu1 %v3614_v16  ;;  %3076 = vmatprep.subr.mxu0 %v4018_v14  ;;  %v4046_v16 = vld [vmem:[%s4629_s1 + $0x198] sm:$0xff] }
 0x11a   :  { %3137 = vmatprep.subr.mxu1 %v3621_v17  ;;  %3077 = vmatpush3.msra.mxu0 %v4018_v14 }
 0x11b   :  { %3138 = vmatpush3.msra.mxu1 %v3621_v17  ;;  %3078 = vmatprep.subr.mxu0 %v4028_v15  ;;  %v4057_v17 = vld [vmem:[%s4629_s1 + $0x190] sm:$0xff] }
 0x11c   :  { %3139 = vmatprep.subr.mxu1 %v3628_v18  ;;  %3079 = vmatpush3.msra.mxu0 %v4028_v15  ;;  %v925_v63 = vpop.permute.xlu0 %924 }
 0x11d   :  { %3140 = vmatpush3.msra.mxu1 %v3628_v18  ;;  %3080 = vmatprep.subr.mxu0 %v4037_v4  ;;  %v4066_v18 = vld [vmem:[%s4629_s1 + $0x188] sm:$0xff] }
 0x11e   :  { %3141 = vmatprep.subr.mxu1 %v3635_v19  ;;  %3081 = vmatpush3.msra.mxu0 %v4037_v4 }
 0x11f   :  { %3142 = vmatpush3.msra.mxu1 %v3635_v19  ;;  %3082 = vmatprep.subr.mxu0 %v4046_v16  ;;  %v927_v19 = vpop.permute.xlu1 %926 }
 0x120   :  { %3143 = vmatprep.subr.mxu1 %v3642_v20  ;;  %3083 = vmatpush3.msra.mxu0 %v4046_v16 }
 0x121   :  { %3144 = vmatpush3.msra.mxu1 %v3642_v20  ;;  %3084 = vmatprep.subr.mxu0 %v4057_v17  ;;  %v4088_v20 = vld [vmem:[%s4629_s1 + $0x238] sm:$0xff] }
 0x122   :  { %3145 = vmatprep.subr.mxu1 %v3651_v21  ;;  %3085 = vmatpush3.msra.mxu0 %v4057_v17 }
 0x123   :  { %3146 = vmatpush3.msra.mxu1 %v3651_v21  ;;  %3086 = vmatprep.subr.mxu0 %v4066_v18  ;;  %v4098_v21 = vld [vmem:[%s4629_s1 + $0x230] sm:$0xff] }
 0x124   :  { %3147 = vmatprep.mubr.msk.f32.mxu1 %vm84_vm3, %v925_v63  ;;  %3169 = vmatprep.subr.mxu1 %v3656_v22  ;;  %v1097_v63 = vpop.permute.xlu1 %1096 }
 0x125   :  { %3087 = vmatpush3.msra.mxu0 %v4066_v18  ;;  %3148 = vmatmul.mubr.msk.f32.vlgmr.msra.gmra.mxu1 %vm84_vm3, %v927_v19 }
 0x126   :  { %3170 = vmatpush3.msra.mxu1 %v3656_v22  ;;  %3088 = vmatprep.subr.mxu0 %v4077_v35  ;;  %v4107_v22 = vld [vmem:[%s4629_s1 + $0x228] sm:$0xff] }
 0x127   :  { %3171 = vmatprep.subr.mxu1 %v3841_v59  ;;  %3089 = vmatpush3.msra.mxu0 %v4077_v35 }
 0x128   :  { %3172 = vmatpush3.msra.mxu1 %v3841_v59  ;;  %3091 = vmatmul.mubr.msk.f32.vlgmr.msra.gmra.mxu0 %vm84_vm3, %v3739_v41  ;;  %v4116_v41 = vld [vmem:[%s4629_s1 + $0x220] sm:$0xff]  ;;  %v4125_v59 = vld [vmem:[%s4629_s1 + $0x218] sm:$0xff] }
 0x129   :  { %3112 = vmatprep.subr.mxu0 %v4088_v20  ;;  %3173 = vmatprep.subr.mxu1 %v3849_v60 }
 0x12a   :  { %3113 = vmatpush3.msra.mxu0 %v4088_v20  ;;  %3128 = vmatprep.mubr.msk.f32.mxu0 %vm84_vm3, %v817_v34 }
 0x12b   :  { %3174 = vmatpush3.msra.mxu1 %v3849_v60  ;;  %3114 = vmatprep.subr.mxu0 %v4098_v21  ;;  %v4134_v60 = vld [vmem:[%s4629_s1 + $0x210] sm:$0xff] }
 0x12c   :  { %3175 = vmatprep.subr.mxu1 %v3856_v62  ;;  %3115 = vmatpush3.msra.mxu0 %v4098_v21 }
 0x12d   :  { %3176 = vmatpush3.msra.mxu1 %v3856_v62  ;;  %3116 = vmatprep.subr.mxu0 %v4107_v22  ;;  %v4143_v62 = vld [vmem:[%s4629_s1 + $0x208] sm:$0xff] }
 0x12e   :  { %3177 = vmatprep.subr.mxu1 %v3864_v0  ;;  %3117 = vmatpush3.msra.mxu0 %v4107_v22 }
 0x12f   :  { %3178 = vmatpush3.msra.mxu1 %v3864_v0  ;;  %3118 = vmatprep.subr.mxu0 %v4116_v41  ;;  %v1095_v0 = vpop.permute.xlu0 %1094 }
 0x130   :  { %3179 = vmatprep.subr.mxu1 %v3871_v1  ;;  %3119 = vmatpush3.msra.mxu0 %v4116_v41 }
 0x131   :  { %3180 = vmatpush3.msra.mxu1 %v3871_v1  ;;  %3120 = vmatprep.subr.mxu0 %v4125_v59  ;;  %v4154_v1 = vld [vmem:[%s4629_s1 + $0x200] sm:$0xff] }
 0x132   :  { %3181 = vmatprep.subr.mxu1 %v3880_v8  ;;  %3121 = vmatpush3.msra.mxu0 %v4125_v59 }
 0x133   :  { %3182 = vmatpush3.msra.mxu1 %v3880_v8  ;;  %3122 = vmatprep.subr.mxu0 %v4134_v60  ;;  %v1281_v8 = vpop.permute.xlu0 %1280 }
 0x134   :  { %3183 = vmatprep.subr.mxu1 %v3887_v23  ;;  %3123 = vmatpush3.msra.mxu0 %v4134_v60 }
 0x135   :  { %3184 = vmatpush3.msra.mxu1 %v3887_v23  ;;  %3124 = vmatprep.subr.mxu0 %v4143_v62 }
 0x136   :  { %3185 = vmatprep.mubr.msk.f32.mxu1 %vm84_vm3, %v1095_v0  ;;  %3207 = vmatprep.subr.mxu1 %v3902_v27 }
 0x137   :  { %3125 = vmatpush3.msra.mxu0 %v4143_v62  ;;  %3186 = vmatmul.mubr.msk.f32.vlgmr.msra.gmra.mxu1 %vm84_vm3, %v1097_v63 }
 0x138   :  { %3208 = vmatpush3.msra.mxu1 %v3902_v27  ;;  %3126 = vmatprep.subr.mxu0 %v4154_v1 }
 0x139   :  { %3209 = vmatprep.subr.mxu1 %v3918_v29  ;;  %3127 = vmatpush3.msra.mxu0 %v4154_v1 }
 0x13a   :  { %3210 = vmatpush3.msra.mxu1 %v3918_v29  ;;  %3129 = vmatmul.mubr.msk.f32.vlgmr.msra.gmra.mxu0 %vm84_vm3, %v4050_v58 }
 0x13b   :  { %3150 = vmatprep.subr.mxu0 %v3534_v3  ;;  %3211 = vmatprep.subr.mxu1 %v3932_v55 }
 0x13c   :  { %3151 = vmatpush3.msra.mxu0 %v3534_v3  ;;  %3166 = vmatprep.mubr.msk.f32.mxu0 %vm84_vm3, %v3729_v39  ;;  %v1283_v3 = vpop.permute.xlu1 %1282  ;;  %v4327_v39 = vld [vmem:[%s4630_s4 + $0x58] sm:$0xff] }
 0x13d   :  { %3212 = vmatpush3.msra.mxu1 %v3932_v55  ;;  %3152 = vmatprep.subr.mxu0 %v3543_v5 }
 0x13e   :  { %3213 = vmatprep.subr.mxu1 %v3946_v57  ;;  %3223 = vmatprep.mubr.msk.f32.mxu1 %vm84_vm3, %v1281_v8 }
 0x13f   :  { %3153 = vmatpush3.msra.mxu0 %v3543_v5  ;;  %3214 = vmatpush3.msra.mxu1 %v3946_v57 }
 0x140   :  { %3154 = vmatprep.subr.mxu0 %v3549_v6  ;;  %3215 = vmatprep.subr.mxu1 %v3960_v61 }
 0x141   :  { %3155 = vmatpush3.msra.mxu0 %v3549_v6  ;;  %3216 = vmatpush3.msra.mxu1 %v3960_v61 }
 0x142   :  { %3156 = vmatprep.subr.mxu0 %v3556_v7  ;;  %3217 = vmatprep.subr.mxu1 %v3974_v24 }
 0x143   :  { %3157 = vmatpush3.msra.mxu0 %v3556_v7  ;;  %3218 = vmatpush3.msra.mxu1 %v3974_v24  ;;  %v1376_v7 = vpop.permute.xlu1 %1375 }
 0x144   :  { %3158 = vmatprep.subr.mxu0 %v3566_v9  ;;  %3219 = vmatprep.subr.mxu1 %v3988_v2 }
 0x145   :  { %3159 = vmatpush3.msra.mxu0 %v3566_v9  ;;  %3220 = vmatpush3.msra.mxu1 %v3988_v2  ;;  %v1374_v2 = vpop.permute.xlu0 %1373 }
 0x146   :  { %3160 = vmatprep.subr.mxu0 %v3573_v10  ;;  %3221 = vmatprep.subr.mxu1 %v3997_v56 }
 0x147   :  { %3161 = vmatpush3.msra.mxu0 %v3573_v10  ;;  %3222 = vmatpush3.msra.mxu1 %v3997_v56  ;;  %v1562_v9 = vpop.permute.xlu1 %1561 }
 0x148   :  { %3162 = vmatprep.subr.mxu0 %v3580_v11  ;;  %3224 = vmatmul.mubr.msk.f32.vlgmr.msra.gmra.mxu1 %vm84_vm3, %v1283_v3 }
 0x149   :  { %3245 = vmatprep.subr.mxu1 %v4008_v26  ;;  %3163 = vmatpush3.msra.mxu0 %v3580_v11  ;;  %v1560_v5 = vpop.permute.xlu0 %1559  ;;  %v4653_v11 = vmov 0.0  }
 0x14a   :  { %3246 = vmatpush3.msra.mxu1 %v4008_v26  ;;  %3261 = vmatprep.mubr.msk.f32.mxu1 %vm84_vm3, %v3803_v50  ;;  %v4397_v50 = vld [vmem:[%s4630_s4 + $0x8] sm:$0xff] }
 0x14b   :  { %3164 = vmatprep.subr.mxu0 %v3587_v12  ;;  %3247 = vmatprep.subr.mxu1 %v4018_v14  ;;  %v1655_v10 = vpop.permute.xlu1 %1654 }
 0x14c   :  { %3165 = vmatpush3.msra.mxu0 %v3587_v12  ;;  %3248 = vmatpush3.msra.mxu1 %v4018_v14  ;;  %v4654_v12 = vld [vmem:[#allocation4_spill] sm:$0xff] }
 0x14d   :  { %3167 = vmatmul.mubr.msk.f32.vlgmr.msra.gmra.mxu0 %vm84_vm3, %v3771_v46  ;;  %3188 = vmatprep.subr.mxu0 %v3594_v13  ;;  %v1653_v6 = vpop.permute.xlu0 %1652  ;;  %v4367_v46 = vld [vmem:[%s4630_s4 + $0x28] sm:$0xff] }
 0x14e   :  { %3249 = vmatprep.subr.mxu1 %v4028_v15  ;;  %3189 = vmatpush3.msra.mxu0 %v3594_v13  ;;  %v4655_v13 = vld [vmem:[#allocation5_spill] sm:$0xff] }
 0x14f   :  { %3204 = vmatprep.mubr.msk.f32.mxu0 %vm84_vm3, %v3763_v44  ;;  %3250 = vmatpush3.msra.mxu1 %v4028_v15  ;;  %v4353_v44 = vld [vmem:[%s4630_s4 + $0x38] sm:$0xff] }
 0x150   :  { %3190 = vmatprep.subr.mxu0 %v3673_v30  ;;  %3251 = vmatprep.subr.mxu1 %v4037_v4 }
 0x151   :  { %3191 = vmatpush3.msra.mxu0 %v3673_v30  ;;  %3252 = vmatpush3.msra.mxu1 %v4037_v4  ;;  %v4656_v30 = vld [vmem:[#allocation6_spill] sm:$0xff] }
 0x152   :  { %3192 = vmatprep.subr.mxu0 %v3681_v31  ;;  %3253 = vmatprep.subr.mxu1 %v4046_v16 }
 0x153   :  { %3193 = vmatpush3.msra.mxu0 %v3681_v31  ;;  %3254 = vmatpush3.msra.mxu1 %v4046_v16  ;;  %v4657_v31 = vld [vmem:[#allocation7_spill] sm:$0xff] }
 0x154   :  { %3194 = vmatprep.subr.mxu0 %v3689_v32  ;;  %3255 = vmatprep.subr.mxu1 %v4057_v17 }
 0x155   :  { %3195 = vmatpush3.msra.mxu0 %v3689_v32  ;;  %3256 = vmatpush3.msra.mxu1 %v4057_v17  ;;  %v4658_v32 = vld [vmem:[#allocation8_spill] sm:$0xff] }
 0x156   :  { %3196 = vmatprep.subr.mxu0 %v3697_v33  ;;  %3257 = vmatprep.subr.mxu1 %v4066_v18 }
 0x157   :  { %3197 = vmatpush3.msra.mxu0 %v3697_v33  ;;  %3258 = vmatpush3.msra.mxu1 %v4066_v18  ;;  %v4299_v33 = vld [vmem:[%s4630_s4 + $0x78] sm:$0xff] }
 0x158   :  { %3198 = vmatprep.subr.mxu0 %v3708_v36  ;;  %3259 = vmatprep.subr.mxu1 %v4077_v35 }
 0x159   :  { %3199 = vmatpush3.msra.mxu0 %v3708_v36  ;;  %3260 = vmatpush3.msra.mxu1 %v4077_v35  ;;  %v4306_v36 = vld [vmem:[%s4630_s4 + $0x70] sm:$0xff] }
 0x15a   :  { %3200 = vmatprep.subr.mxu0 %v3716_v37  ;;  %3262 = vmatmul.mubr.msk.f32.vlgmr.msra.gmra.mxu1 %vm84_vm3, %v3831_v54 }
 0x15b   :  { %3283 = vmatprep.subr.mxu1 %v4088_v20  ;;  %3201 = vmatpush3.msra.mxu0 %v3716_v37  ;;  %v4313_v37 = vld [vmem:[%s4630_s4 + $0x68] sm:$0xff] }
 0x15c   :  { %3284 = vmatpush3.msra.mxu1 %v4088_v20  ;;  %3299 = vmatprep.mubr.msk.f32.mxu1 %vm84_vm3, %v1653_v6 }
 0x15d   :  { %3202 = vmatprep.subr.mxu0 %v3725_v38  ;;  %3285 = vmatprep.subr.mxu1 %v4098_v21 }
 0x15e   :  { %3203 = vmatpush3.msra.mxu0 %v3725_v38  ;;  %3286 = vmatpush3.msra.mxu1 %v4098_v21  ;;  %v4320_v38 = vld [vmem:[%s4630_s4 + $0x60] sm:$0xff] }
 0x15f   :  { %3205 = vmatmul.mubr.msk.f32.vlgmr.msra.gmra.mxu0 %vm84_vm3, %v3811_v52  ;;  %3226 = vmatprep.subr.mxu0 %v3736_v40 }
 0x160   :  { %3287 = vmatprep.subr.mxu1 %v4107_v22  ;;  %3227 = vmatpush3.msra.mxu0 %v3736_v40  ;;  %v4334_v40 = vld [vmem:[%s4630_s4 + $0x50] sm:$0xff] }
 0x161   :  { %3242 = vmatprep.mubr.msk.f32.mxu0 %vm84_vm3, %v1374_v2  ;;  %3288 = vmatpush3.msra.mxu1 %v4107_v22 }
 0x162   :  { %3228 = vmatprep.subr.mxu0 %v3749_v42  ;;  %3289 = vmatprep.subr.mxu1 %v4116_v41 }
 0x163   :  { %3229 = vmatpush3.msra.mxu0 %v3749_v42  ;;  %3290 = vmatpush3.msra.mxu1 %v4116_v41  ;;  %v4339_v42 = vld [vmem:[%s4630_s4 + $0x48] sm:$0xff] }
 0x164   :  { %3230 = vmatprep.subr.mxu0 %v3756_v43  ;;  %3291 = vmatprep.subr.mxu1 %v4125_v59 }
 0x165   :  { %3231 = vmatpush3.msra.mxu0 %v3756_v43  ;;  %3292 = vmatpush3.msra.mxu1 %v4125_v59  ;;  %v4346_v43 = vld [vmem:[%s4630_s4 + $0x40] sm:$0xff] }
 0x166   :  { %3232 = vmatprep.subr.mxu0 %v3769_v45  ;;  %3293 = vmatprep.subr.mxu1 %v4134_v60 }
 0x167   :  { %3233 = vmatpush3.msra.mxu0 %v3769_v45  ;;  %3294 = vmatpush3.msra.mxu1 %v4134_v60  ;;  %v4360_v45 = vld [vmem:[%s4630_s4 + $0x30] sm:$0xff] }
 0x168   :  { %3234 = vmatprep.subr.mxu0 %v3778_v47  ;;  %3295 = vmatprep.subr.mxu1 %v4143_v62 }
 0x169   :  { %3235 = vmatpush3.msra.mxu0 %v3778_v47  ;;  %3296 = vmatpush3.msra.mxu1 %v4143_v62  ;;  %v4376_v47 = vld [vmem:[%s4630_s4 + $0x20] sm:$0xff] }
 0x16a   :  { %3236 = vmatprep.subr.mxu0 %v3789_v48  ;;  %3297 = vmatprep.subr.mxu1 %v4154_v1 }
 0x16b   :  { %3237 = vmatpush3.msra.mxu0 %v3789_v48  ;;  %3298 = vmatpush3.msra.mxu1 %v4154_v1  ;;  %v4383_v48 = vld [vmem:[%s4630_s4 + $0x18] sm:$0xff] }
 0x16c   :  { %3238 = vmatprep.subr.mxu0 %v3796_v49  ;;  %3300 = vmatmul.mubr.msk.f32.vlgmr.msra.gmra.mxu1 %vm84_vm3, %v1655_v10 }
 0x16d   :  { %3239 = vmatpush3.msra.mxu0 %v3796_v49  ;;  %3337 = vmatprep.subr.mxu1 %v4653_v11  ;;  %v4390_v49 = vld [vmem:[%s4630_s4 + $0x10] sm:$0xff] }
 0x16e   :  { %3240 = vmatprep.subr.mxu0 %v3809_v51  ;;  %3339 = vmatprep.mubr.msk.f32.mxu1 %vm3478_vm4, %v4653_v11 }
 0x16f   :  { %3241 = vmatpush3.msra.mxu0 %v3809_v51  ;;  %v4402_v51 = vld [vmem:[%s4630_s4] sm:$0xff] }
 0x170   :  { %3243 = vmatmul.mubr.msk.f32.vlgmr.msra.gmra.mxu0 %vm84_vm3, %v1376_v7  ;;  %3264 = vmatprep.subr.mxu0 %v3818_v53 }
 0x171   :  { %3265 = vmatpush3.msra.mxu0 %v3818_v53  ;;  %3280 = vmatprep.mubr.msk.f32.mxu0 %vm84_vm3, %v1560_v5  ;;  %v2997_v53 = vpop.f32.mrf.mxu1 }
 0x172   :  { %3266 = vmatprep.subr.mxu0 %v3893_v25 }
 0x173   :  { %3267 = vmatpush3.msra.mxu0 %v3893_v25  ;;  %v234_v23 = vpop.f32.mrf.mxu1 }
 0x174   :  { %3268 = vmatprep.subr.mxu0 %v3909_v28 }
 0x175   :  { %3269 = vmatpush3.msra.mxu0 %v3909_v28  ;;  %v3035_v27 = vpop.f32.mrf.mxu1 }
 0x176   :  { %3270 = vmatprep.subr.mxu0 %v4654_v12 }
 0x177   :  { %3271 = vmatpush3.msra.mxu0 %v4654_v12  ;;  %v420_v29 = vpop.f32.mrf.mxu1 }
 0x178   :  { %3272 = vmatprep.subr.mxu0 %v4655_v13 }
 0x179   :  { %3273 = vmatpush3.msra.mxu0 %v4655_v13 }
 0x17a   :  { %3274 = vmatprep.subr.mxu0 %v4656_v30 }
 0x17b   :  { %3275 = vmatpush3.msra.mxu0 %v4656_v30 }
 0x17c   :  { %3276 = vmatprep.subr.mxu0 %v4657_v31 }
 0x17d   :  { %3277 = vmatpush3.msra.mxu0 %v4657_v31 }
 0x17e   :  { %3278 = vmatprep.subr.mxu0 %v4658_v32 }
 0x17f   :  { %3279 = vmatpush3.msra.mxu0 %v4658_v32 }
 0x180   :  { %3281 = vmatmul.mubr.msk.f32.vlgmr.msra.gmra.mxu0 %vm84_vm3, %v1562_v9  ;;  %3302 = vmatprep.subr.mxu0 %v4299_v33 }
 0x181   :  { %3303 = vmatpush3.msra.mxu0 %v4299_v33 }
 0x182   :  { %3304 = vmatprep.subr.mxu0 %v4306_v36 }
 0x183   :  { %3305 = vmatpush3.msra.mxu0 %v4306_v36 }
 0x184   :  { %3306 = vmatprep.subr.mxu0 %v4313_v37 }
 0x185   :  { %3307 = vmatpush3.msra.mxu0 %v4313_v37 }
 0x186   :  { %3308 = vmatprep.subr.mxu0 %v4320_v38 }
 0x187   :  { %3309 = vmatpush3.msra.mxu0 %v4320_v38 }
 0x188   :  { %3310 = vmatprep.subr.mxu0 %v4327_v39 }
 0x189   :  { %3311 = vmatpush3.msra.mxu0 %v4327_v39 }
 0x18a   :  { %3312 = vmatprep.subr.mxu0 %v4334_v40 }
 0x18b   :  { %3313 = vmatpush3.msra.mxu0 %v4334_v40 }
 0x18c   :  { %3314 = vmatprep.subr.mxu0 %v4339_v42 }
 0x18d   :  { %3315 = vmatpush3.msra.mxu0 %v4339_v42 }
 0x18e   :  { %3316 = vmatprep.subr.mxu0 %v4346_v43 }
 0x18f   :  { %3317 = vmatpush3.msra.mxu0 %v4346_v43 }
 0x190   :  { %3318 = vmatprep.subr.mxu0 %v4353_v44 }
 0x191   :  { %3319 = vmatpush3.msra.mxu0 %v4353_v44 }
 0x192   :  { %3320 = vmatprep.subr.mxu0 %v4360_v45 }
 0x193   :  { %3321 = vmatpush3.msra.mxu0 %v4360_v45 }
 0x194   :  { %3322 = vmatprep.subr.mxu0 %v4367_v46 }
 0x195   :  { %3323 = vmatpush3.msra.mxu0 %v4367_v46 }
 0x196   :  { %3324 = vmatprep.subr.mxu0 %v4376_v47 }
 0x197   :  { %3325 = vmatpush3.msra.mxu0 %v4376_v47 }
 0x198   :  { %3326 = vmatprep.subr.mxu0 %v4383_v48 }
 0x199   :  { %3327 = vmatpush3.msra.mxu0 %v4383_v48 }
 0x19a   :  { %3328 = vmatprep.subr.mxu0 %v4390_v49 }
 0x19b   :  { %3329 = vmatpush3.msra.mxu0 %v4390_v49 }
 0x19c   :  { %3330 = vmatprep.subr.mxu0 %v4397_v50 }
 0x19d   :  { %3331 = vmatpush3.msra.mxu0 %v4397_v50 }
 0x19e   :  { %3332 = vmatprep.subr.mxu0 %v4402_v51 }
 0x19f   :  { %3333 = vmatpush3.msra.mxu0 %v4402_v51 }
 0x1a0   :  { %3377 = vmatprep.subr.mxu0 %v4653_v11 }
 0x1b4   :  { %v2978_v52 = vpop.f32.mrf.mxu0 }
 0x1b5   :  { %v240_v41 = vadd.f32 %v2997_v53, %v2978_v52 }
 0x1b6   :  { %v155_v54 = vpop.f32.mrf.mxu0 }
 0x1b7   :  { %v235_v21 = vadd.f32 %v234_v23, %v155_v54 }
 0x1c1   :  { %v3073_v55 = vpop.f32.mrf.mxu1 }
 0x1c3   :  { %v608_v57 = vpop.f32.mrf.mxu1 }
 0x1c5   :  { %v3016_v25 = vpop.f32.mrf.mxu0 }
 0x1c6   :  { %v336_v0 = vadd.f32 %v3016_v25, %v240_v41 }
 0x1c7   :  { %v326_v28 = vpop.f32.mrf.mxu0 }
 0x1c8   :  { %v335_v60 = vadd.f32 %v326_v28, %v235_v21  ;;  %v430_v7 = vadd.f32 %v3035_v27, %v336_v0 }
 0x1ca   :  { %v429_v5 = vadd.f32 %v420_v29, %v335_v60 }
 0x1d2   :  { %v3111_v24 = vpop.f32.mrf.mxu1 }
 0x1d4   :  { %v796_v14 = vpop.f32.mrf.mxu1 }
 0x1d6   :  { %v3054_v35 = vpop.f32.mrf.mxu0 }
 0x1d7   :  { %v524_v13 = vadd.f32 %v3054_v35, %v430_v7 }
 0x1d8   :  { %v514_v56 = vpop.f32.mrf.mxu0 }
 0x1d9   :  { %v523_v10 = vadd.f32 %v514_v56, %v429_v5  ;;  %v618_v23 = vadd.f32 %v3073_v55, %v524_v13 }
 0x1db   :  { %v617_v53 = vadd.f32 %v608_v57, %v523_v10 }
 0x1e5   :  { %v3149_v4 = vpop.f32.mrf.mxu1 }
 0x1e7   :  { %v998_v34 = vpop.f32.mrf.mxu1 }
 0x1e8   :  { %v3092_v61 = vpop.f32.mrf.mxu0 }
 0x1ea   :  { %v702_v26 = vpop.f32.mrf.mxu0 }
 0x1eb   :  { %v711_v28 = vadd.f32 %v702_v26, %v617_v53 }
 0x1f7   :  { %v3187_v17 = vpop.f32.mrf.mxu1 }
 0x1f9   :  { %v1168_v59 = vpop.f32.mrf.mxu1 }
 0x1fa   :  { %v3130_v15 = vpop.f32.mrf.mxu0 }
 0x1fc   :  { %v890_v16 = vpop.f32.mrf.mxu0 }
 0x208   :  { %v3225_v1 = vpop.f32.mrf.mxu1 }
 0x20a   :  { %v1354_v9 = vpop.f32.mrf.mxu1 }
 0x20d   :  { %v3168_v58 = vpop.f32.mrf.mxu0 }
 0x20e   :  { %v1083_v19 = vadd.f32 %v3168_v58, %v3149_v4 }
 0x20f   :  { %v1077_v18 = vpop.f32.mrf.mxu0 }
 0x210   :  { %v1078_v22 = vadd.f32 %v1077_v18, %v998_v34  ;;  %v1178_v62 = vadd.f32 %v3187_v17, %v1083_v19  ;;  %v712_v34 = vadd.f32 %v3092_v61, %v618_v23  ;;  %v805_v19 = vadd.f32 %v796_v14, %v711_v28  ;;  %v2026_v28 = vld [vmem:[%s4633_s3] sm:$0x1] }
 0x212   :  { %v1177_v3 = vadd.f32 %v1168_v59, %v1078_v22  ;;  %v4411_v22 = vadd.f32 %v890_v16, %v805_v19  ;;  %v2204_v19 = vld [vmem:[%s4634_s6 + $0x48] sm:$0xff] }
 0x21a   :  { %v3263_v30 = vpop.f32.mrf.mxu1 }
 0x21c   :  { %v1540_v25 = vpop.f32.mrf.mxu1 }
 0x21f   :  { %v3206_v20 = vpop.f32.mrf.mxu0 }
 0x220   :  { %v1271_v8 = vadd.f32 %v3206_v20, %v1178_v62  ;;  %v806_v20 = vadd.f32 %v3111_v24, %v712_v34  ;;  %v4424_v24 = vld [vmem:[%s4631_s5] sm:$0xff] }
 0x221   :  { %v1261_v63 = vpop.f32.mrf.mxu0  ;;  %3338 = vmatpush3.msra.mxu1 %v4424_v24 }
 0x222   :  { %v1270_v6 = vadd.f32 %v1261_v63, %v1177_v3  ;;  %v1364_v12 = vadd.f32 %v3225_v1, %v1271_v8  ;;  %v4415_v55 = vadd.f32 %v3130_v15, %v806_v20  ;;  %3342 = vmatprep.subr.mxu1 %v4299_v33  ;;  %v2202_v20 = vld [vmem:[%s4634_s6 + $0x38] sm:$0xff] }
 0x224   :  { %v1363_v52 = vadd.f32 %v1354_v9, %v1270_v6 }
 0x22c   :  { %v3301_v58 = vpop.f32.mrf.mxu1 }
 0x22e   :  { %v1726_v35 = vpop.f32.mrf.mxu1 }
 0x230   :  { %v3244_v2 = vpop.f32.mrf.mxu0 }
 0x231   :  { %v1457_v32 = vadd.f32 %v3244_v2, %v1364_v12 }
 0x232   :  { %v1447_v31 = vpop.f32.mrf.mxu0 }
 0x233   :  { %v1456_v54 = vadd.f32 %v1447_v31, %v1363_v52  ;;  %v1550_v4 = vadd.f32 %v3263_v30, %v1457_v32 }
 0x235   :  { %v1549_v18 = vadd.f32 %v1540_v25, %v1456_v54  ;;  %v2024_v54 = vld [vmem:[%s4632_s2] sm:$0x1] }
 0x240   :  { %v3282_v17 = vpop.f32.mrf.mxu0 }
 0x241   :  { %v1643_v29 = vadd.f32 %v3282_v17, %v1550_v4  ;;  %v2209_v17 = vld [vmem:[%s4634_s6 + $0x70] sm:$0xff] }
 0x242   :  { %v1633_v27 = vpop.f32.mrf.mxu0 }
 0x243   :  { %v1642_v56 = vadd.f32 %v1633_v27, %v1549_v18  ;;  %v4409_v21 = vadd.f32 %v3301_v58, %v1643_v29  ;;  %v2210_v58 = vld [vmem:[%s4634_s6 + $0x78] sm:$0xff]  ;;  %v2208_v29 = vld [vmem:[%s4634_s6 + $0x68] sm:$0xff]  ;;  %v2205_v27 = vld [vmem:[%s4634_s6 + $0x50] sm:$0xff] }
 0x244   :  { %v2206_v18 = vld [vmem:[%s4634_s6 + $0x58] sm:$0xff] }
 0x245   :  { %v4413_v57 = vadd.f32 %v1726_v35, %v1642_v56  ;;  %v1745_v26 = vadd.f32 %v4409_v21, %v4415_v55  ;;  %v2203_v56 = vld [vmem:[%s4634_s6 + $0x40] sm:$0xff]  ;;  %v2201_v35 = vld [vmem:[%s4634_s6 + $0x30] sm:$0xff] }
 0x247   :  { %v1744_v61 = vadd.f32 %v4413_v57, %v4411_v22 }
 0x249   :  { %3334 = vmatprep.mubr.f32.mxu0 %v1744_v61  ;;  %v2200_v61 = vld [vmem:[%s4634_s6 + $0x28] sm:$0xff] }
 0x24a   :  { %3335 = vmatmul.mubr.f32.vlgmr.msra.gmra.mxu0 %v1745_v26  ;;  %v2199_v26 = vld [vmem:[%s4634_s6 + $0x20] sm:$0xff] }
 0x24b   :  { %3378 = vmatpush3.msra.mxu0 %v4424_v24  ;;  %3379 = vmatprep.mubr.msk.f32.mxu0 %vm3478_vm4, %v4653_v11 }
 0x24c   :  { %3382 = vmatprep.subr.mxu0 %v4653_v11 }
 0x30a   :  { %v3336_v14 = vpop.f32.mrf.mxu0 }
 0x30b   :  { %v1839_v16 = vsel %vm1837_vm5, %v3336_v14, 0.0  ;;  %v2197_v14 = vld [vmem:[%s4634_s6 + $0x10] sm:$0xff] }
 0x30c   :  { %v1828_v15 = vpop.f32.mrf.mxu0 }
 0x30d   :  { %v1838_v41 = vsel %vm1837_vm5, %v1828_v15, 0.0 }
 0x30e   :  { %v1840_v59 = vadd.f32 %v1839_v16, %v1838_v41  ;;  %v2196_v16 = vld [vmem:[%s4634_s6 + $0x8] sm:$0xff] }
 0x310   :  { %v1841_v60 = vrot.slane %v1840_v59, 4 }
 0x312   :  { %v1842_v62 = vadd.f32 %v1841_v60, %v1840_v59  ;;  %v2195_v60 = vld [vmem:[%s4634_s6] sm:$0xff] }
 0x314   :  { %v1843_v0 = vrot.slane %v1842_v62, 2 }
 0x316   :  { %v1844_v1 = vadd.f32 %v1843_v0, %v1842_v62 }
 0x318   :  { %v1845_v63 = vrot.slane %v1844_v1, 1 }
 0x31a   :  { %v1846_v8 = vadd.f32 %v1845_v63, %v1844_v1 }
 0x31c   :  { %v4436_v3 = vmul.f32 0.001953125, %v1846_v8 }
 0x31e   :  { %3340 = vmatmul.mubr.msk.f32.vlgmr.msra.gmra.mxu1 %vm1837_vm5, %v4436_v3 }
 0x31f   :  { %3343 = vmatpush3.msra.mxu1 %v4299_v33  ;;  %v1923_v33 = vlaneseq }
 0x320   :  { %3344 = vmatprep.subr.mxu1 %v4306_v36 }
 0x321   :  { %3345 = vmatpush3.msra.mxu1 %v4306_v36  ;;  %v1924_v36 = vshrl.u32 %v1923_v33, 7 }
 0x322   :  { %3346 = vmatprep.subr.mxu1 %v4313_v37 }
 0x323   :  { %3347 = vmatpush3.msra.mxu1 %v4313_v37  ;;  %v4471_v37 = vsub.s32 0, %v1924_v36 }
 0x324   :  { %3348 = vmatprep.subr.mxu1 %v4320_v38 }
 0x325   :  { %3349 = vmatpush3.msra.mxu1 %v4320_v38 }
 0x326   :  { %3350 = vmatprep.subr.mxu1 %v4327_v39 }
 0x327   :  { %3351 = vmatpush3.msra.mxu1 %v4327_v39 }
 0x328   :  { %3352 = vmatprep.subr.mxu1 %v4334_v40 }
 0x329   :  { %3353 = vmatpush3.msra.mxu1 %v4334_v40 }
 0x32a   :  { %3354 = vmatprep.subr.mxu1 %v4339_v42 }
 0x32b   :  { %3355 = vmatpush3.msra.mxu1 %v4339_v42 }
 0x32c   :  { %3356 = vmatprep.subr.mxu1 %v4346_v43 }
 0x32d   :  { %3357 = vmatpush3.msra.mxu1 %v4346_v43 }
 0x32e   :  { %3358 = vmatprep.subr.mxu1 %v4353_v44 }
 0x32f   :  { %3359 = vmatpush3.msra.mxu1 %v4353_v44 }
 0x330   :  { %3360 = vmatprep.subr.mxu1 %v4360_v45 }
 0x331   :  { %3361 = vmatpush3.msra.mxu1 %v4360_v45 }
 0x332   :  { %3362 = vmatprep.subr.mxu1 %v4367_v46 }
 0x333   :  { %3363 = vmatpush3.msra.mxu1 %v4367_v46 }
 0x334   :  { %3364 = vmatprep.subr.mxu1 %v4376_v47 }
 0x335   :  { %3365 = vmatpush3.msra.mxu1 %v4376_v47 }
 0x336   :  { %3366 = vmatprep.subr.mxu1 %v4383_v48 }
 0x337   :  { %3367 = vmatpush3.msra.mxu1 %v4383_v48 }
 0x338   :  { %3368 = vmatprep.subr.mxu1 %v4390_v49 }
 0x339   :  { %3369 = vmatpush3.msra.mxu1 %v4390_v49 }
 0x33a   :  { %3370 = vmatprep.subr.mxu1 %v4397_v50 }
 0x33b   :  { %3371 = vmatpush3.msra.mxu1 %v4397_v50 }
 0x33c   :  { %3372 = vmatprep.subr.mxu1 %v4402_v51 }
 0x33d   :  { %3373 = vmatpush3.msra.mxu1 %v4402_v51 }
 0x33e   :  { %3387 = vmatprep.subr.mxu1 %v2210_v58 }
 0x3de   :  { %v1919_v38 = vpop.f32.mrf.mxu1 }
 0x3df   :  { %v1926_v39 = vrot.slane %v1919_v38, %v4471_v37 }
 0x3e0   :  { %v3341_v40 = vpop.f32.mrf.mxu1 }
 0x3e1   :  { %v1928_v42 = vsub.f32 %v4415_v55, %v1926_v39  ;;  %v1930_v43 = vsub.f32 %v4409_v21, %v1926_v39  ;;  %v1927_v44 = vsub.f32 %v4411_v22, %v1926_v39  ;;  %v1929_v45 = vsub.f32 %v4413_v57, %v1926_v39 }
 0x3e3   :  { %v1932_v46 = vmul.f32 %v1928_v42, %v1928_v42  ;;  %v1934_v47 = vmul.f32 %v1930_v43, %v1930_v43  ;;  %v1931_v48 = vmul.f32 %v1927_v44, %v1927_v44  ;;  %v1933_v49 = vmul.f32 %v1929_v45, %v1929_v45 }
 0x3e5   :  { %v1935_v50 = vadd.f32 %v1933_v49, %v1931_v48  ;;  %v1936_v51 = vadd.f32 %v1934_v47, %v1932_v46 }
 0x3e7   :  { %3374 = vmatprep.mubr.f32.mxu1 %v1935_v50 }
 0x3e8   :  { %3375 = vmatmul.mubr.f32.vlgmr.msra.gmra.mxu1 %v1936_v51 }
 0x3e9   :  { %3388 = vmatpush3.msra.mxu1 %v2210_v58 }
 0x3ea   :  { %3389 = vmatprep.subr.mxu1 %v2209_v17 }
 0x3eb   :  { %3390 = vmatpush3.msra.mxu1 %v2209_v17 }
 0x3ec   :  { %3391 = vmatprep.subr.mxu1 %v2208_v29 }
 0x3ed   :  { %3392 = vmatpush3.msra.mxu1 %v2208_v29 }
 0x4a8   :  { %v3376_v2 = vpop.f32.mrf.mxu1 }
 0x4a9   :  { %v2013_v6 = vsel %vm1837_vm5, %v3376_v2, 0.0 }
 0x4aa   :  { %v2003_v5 = vpop.f32.mrf.mxu1 }
 0x4ab   :  { %v2012_v7 = vsel %vm1837_vm5, %v2003_v5, 0.0 }
 0x4ac   :  { %v2014_v9 = vadd.f32 %v2013_v6, %v2012_v7 }
 0x4ae   :  { %v2015_v10 = vrot.slane %v2014_v9, 4 }
 0x4b0   :  { %v2016_v12 = vadd.f32 %v2015_v10, %v2014_v9 }
 0x4b2   :  { %v2017_v13 = vrot.slane %v2016_v12, 2 }
 0x4b4   :  { %v2018_v30 = vadd.f32 %v2017_v13, %v2016_v12 }
 0x4b6   :  { %v2019_v31 = vrot.slane %v2018_v30, 1 }
 0x4b8   :  { %v2020_v32 = vadd.f32 %v2019_v31, %v2018_v30 }
 0x4ba   :  { %v2021_v52 = vmul.f32 0.001953125, %v2020_v32 }
 0x4bc   :  { %v2022_v53 = vadd.f32 1e-05, %v2021_v52 }
 0x4be   :  { %3472 = vrsqrt.f32 %v2022_v53 }
 0x4cb   :  { %v3473_v23 = vpop.eup %3472 }
 0x4cc   :  { %v2025_v25 = vmul.f32 %v3473_v23, %v2024_v54 }
 0x4ce   :  { %3380 = vmatmul.mubr.msk.f32.vlgmr.msra.gmra.mxu0 %vm1837_vm5, %v2025_v25  ;;  %v2027_v4 = vmul.f32 %v2025_v25, %v4436_v3 }
 0x4cf   :  { %3383 = vmatpush3.msra.mxu0 %v4424_v24  ;;  %3384 = vmatprep.mubr.msk.f32.mxu0 %vm3478_vm4, %v4653_v11  ;;  %v2207_v11 = vld [vmem:[%s4634_s6 + $0x60] sm:$0xff]  ;;  %v2198_v24 = vld [vmem:[%s4634_s6 + $0x18] sm:$0xff] }
 0x4d0   :  { %v2028_v34 = vsub.f32 %v2026_v28, %v2027_v4  ;;  %3422 = vmatprep.subr.mxu0 %v2210_v58  ;;  %3393 = vmatprep.subr.mxu1 %v2207_v11 }
 0x4d1   :  { %3394 = vmatpush3.msra.mxu1 %v2207_v11 }
 0x4d2   :  { %3385 = vmatmul.mubr.msk.f32.vlgmr.msra.gmra.mxu0 %vm1837_vm5, %v2028_v34  ;;  %3395 = vmatprep.subr.mxu1 %v2206_v18 }
 0x4d3   :  { %3423 = vmatpush3.msra.mxu0 %v2210_v58  ;;  %3396 = vmatpush3.msra.mxu1 %v2206_v18 }
 0x4d4   :  { %3424 = vmatprep.subr.mxu0 %v2209_v17  ;;  %3397 = vmatprep.subr.mxu1 %v2205_v27 }
 0x4d5   :  { %3425 = vmatpush3.msra.mxu0 %v2209_v17  ;;  %3398 = vmatpush3.msra.mxu1 %v2205_v27 }
 0x4d6   :  { %3426 = vmatprep.subr.mxu0 %v2208_v29  ;;  %3399 = vmatprep.subr.mxu1 %v2204_v19 }
 0x4d7   :  { %3427 = vmatpush3.msra.mxu0 %v2208_v29  ;;  %3400 = vmatpush3.msra.mxu1 %v2204_v19 }
 0x4d8   :  { %3428 = vmatprep.subr.mxu0 %v2207_v11  ;;  %3401 = vmatprep.subr.mxu1 %v2203_v56 }
 0x4d9   :  { %3429 = vmatpush3.msra.mxu0 %v2207_v11  ;;  %3402 = vmatpush3.msra.mxu1 %v2203_v56 }
 0x4da   :  { %3430 = vmatprep.subr.mxu0 %v2206_v18  ;;  %3403 = vmatprep.subr.mxu1 %v2202_v20 }
 0x4db   :  { %3431 = vmatpush3.msra.mxu0 %v2206_v18  ;;  %3404 = vmatpush3.msra.mxu1 %v2202_v20 }
 0x4dc   :  { %3432 = vmatprep.subr.mxu0 %v2205_v27  ;;  %3405 = vmatprep.subr.mxu1 %v2201_v35 }
 0x4dd   :  { %3433 = vmatpush3.msra.mxu0 %v2205_v27  ;;  %3406 = vmatpush3.msra.mxu1 %v2201_v35 }
 0x4de   :  { %3434 = vmatprep.subr.mxu0 %v2204_v19  ;;  %3407 = vmatprep.subr.mxu1 %v2200_v61 }
 0x4df   :  { %3435 = vmatpush3.msra.mxu0 %v2204_v19  ;;  %3408 = vmatpush3.msra.mxu1 %v2200_v61 }
 0x4e0   :  { %3436 = vmatprep.subr.mxu0 %v2203_v56  ;;  %3409 = vmatprep.subr.mxu1 %v2199_v26 }
 0x4e1   :  { %3437 = vmatpush3.msra.mxu0 %v2203_v56  ;;  %3410 = vmatpush3.msra.mxu1 %v2199_v26 }
 0x4e2   :  { %3438 = vmatprep.subr.mxu0 %v2202_v20  ;;  %3411 = vmatprep.subr.mxu1 %v2198_v24 }
 0x4e3   :  { %3439 = vmatpush3.msra.mxu0 %v2202_v20  ;;  %3412 = vmatpush3.msra.mxu1 %v2198_v24 }
 0x4e4   :  { %3440 = vmatprep.subr.mxu0 %v2201_v35  ;;  %3413 = vmatprep.subr.mxu1 %v2197_v14 }
 0x4e5   :  { %3441 = vmatpush3.msra.mxu0 %v2201_v35  ;;  %3414 = vmatpush3.msra.mxu1 %v2197_v14 }
 0x4e6   :  { %3442 = vmatprep.subr.mxu0 %v2200_v61  ;;  %3415 = vmatprep.subr.mxu1 %v2196_v16 }
 0x4e7   :  { %3443 = vmatpush3.msra.mxu0 %v2200_v61  ;;  %3416 = vmatpush3.msra.mxu1 %v2196_v16 }
 0x4e8   :  { %3444 = vmatprep.subr.mxu0 %v2199_v26  ;;  %3417 = vmatprep.subr.mxu1 %v2195_v60 }
 0x4e9   :  { %3445 = vmatpush3.msra.mxu0 %v2199_v26  ;;  %3418 = vmatpush3.msra.mxu1 %v2195_v60 }
 0x4ea   :  { %3446 = vmatprep.subr.mxu0 %v2198_v24 }
 0x4eb   :  { %3447 = vmatpush3.msra.mxu0 %v2198_v24 }
 0x4ec   :  { %3448 = vmatprep.subr.mxu0 %v2197_v14 }
 0x4ed   :  { %3449 = vmatpush3.msra.mxu0 %v2197_v14 }
 0x4ee   :  { %3450 = vmatprep.subr.mxu0 %v2196_v16 }
 0x4ef   :  { %3451 = vmatpush3.msra.mxu0 %v2196_v16 }
 0x4f0   :  { %3452 = vmatprep.subr.mxu0 %v2195_v60 }
 0x4f1   :  { %3453 = vmatpush3.msra.mxu0 %v2195_v60 }
 0x58e   :  { %v2098_v15 = vpop.f32.mrf.mxu0 }
 0x58f   :  { %v2178_v41 = vrot.slane %v2098_v15, %v4471_v37 }
 0x590   :  { %v3381_v59 = vpop.f32.mrf.mxu0 }
 0x591   :  { %v2180_v0 = vmul.f32 %v2178_v41, %v4415_v55  ;;  %v2356_v63 = vmul.f32 %v2178_v41, %v4409_v21  ;;  %v2179_v8 = vmul.f32 %v2178_v41, %v4411_v22  ;;  %v2355_v3 = vmul.f32 %v2178_v41, %v4413_v57 }
 0x592   :  { %v2171_v62 = vpop.f32.mrf.mxu0 }
 0x593   :  { %v2184_v1 = vrot.slane %v2171_v62, %v4471_v37 }
 0x594   :  { %v3386_v33 = vpop.f32.mrf.mxu0 }
 0x595   :  { %v2186_v36 = vadd.f32 %v2184_v1, %v2180_v0  ;;  %v2358_v38 = vadd.f32 %v2356_v63, %v2184_v1  ;;  %v2185_v39 = vadd.f32 %v2184_v1, %v2179_v8  ;;  %v2357_v40 = vadd.f32 %v2355_v3, %v2184_v1 }
 0x597   :  { %v2188_v42 = vmax.f32 %v2186_v36, 0.0  ;;  %v2360_v43 = vmax.f32 %v2358_v38, 0.0  ;;  %v2187_v44 = vmax.f32 %v2185_v39, 0.0  ;;  %v2359_v55 = vmax.f32 %v2357_v40, 0.0 }
 0x599   :  { %v3467_v45 = vpack.i.bf16 %v2360_v43, %v2188_v42  ;;  %v3462_v46 = vpack.i.bf16 %v2359_v55, %v2187_v44 }
 0x59b   :  { %3468 = vrot.lane.b32.xlu1 %v3467_v45, %s3476_s0  ;;  %3463 = vrot.lane.b32.xlu0 %v3462_v46, %s3476_s0 }
 0x60d   :  { %v3469_v21 = vpop.permute.xlu1 %3468  ;;  %v3464_v22 = vpop.permute.xlu0 %3463 }
 0x60e   :  { %v3471_v37 = vunpack.i.h.bf16 %v3469_v21  ;;  %v3470_v57 = vunpack.i.l.bf16 %v3469_v21  ;;  %v3466_v47 = vunpack.i.h.bf16 %v3464_v22  ;;  %v3465_v48 = vunpack.i.l.bf16 %v3464_v22 }
 0x610   :  { %v2366_v49 = vmax.f32 %v2360_v43, %v3471_v37  ;;  %v2194_v50 = vmax.f32 %v2188_v42, %v3470_v57  ;;  %v2365_v51 = vmax.f32 %v2359_v55, %v3466_v47  ;;  %v2193_v2 = vmax.f32 %v2187_v44, %v3465_v48 }
 0x612   :  { %3419 = vmatprep.mubr.f32.mxu1 %v2193_v2  ;;  %3454 = vmatprep.mubr.f32.mxu0 %v2365_v51 }
 0x613   :  { %3420 = vmatmul.mubr.f32.vlgmr.msra.gmra.mxu1 %v2194_v50  ;;  %3455 = vmatmul.mubr.f32.vlgmr.msra.gmra.mxu0 %v2366_v49 }
 0x6d3   :  { %v3421_v5 = vpop.f32.mrf.mxu1  ;;  %v3456_v6 = vpop.f32.mrf.mxu0 }
 0x6d4   :  { %v2323_v7 = vsel %vm2286_vm6, %v3421_v5, -inf  ;;  %v2331_v9 = vsel %vm2296_vm7, %v3421_v5, -inf  ;;  %v2339_v10 = vsel %vm2305_vm8, %v3421_v5, -inf  ;;  %v2347_v12 = vsel %vm2314_vm9, %v3421_v5, -inf }
 0x6d5   :  { %v2324_v13 = vrot.slane %v2323_v7, 4  ;;  %v2332_v30 = vrot.slane %v2331_v9, 4  ;;  %v2340_v31 = vrot.slane %v2339_v10, 4  ;;  %v2348_v32 = vrot.slane %v2347_v12, 4  ;;  %v2277_v39 = vpop.f32.mrf.mxu1  ;;  %v2449_v48 = vpop.f32.mrf.mxu0 }
 0x6d6   :  { %v2491_v52 = vsel %vm2286_vm6, %v3456_v6, -inf  ;;  %v2499_v53 = vsel %vm2296_vm7, %v3456_v6, -inf  ;;  %v2507_v54 = vsel %vm2305_vm8, %v3456_v6, -inf  ;;  %v2515_v23 = vsel %vm2314_vm9, %v3456_v6, -inf }
 0x6d7   :  { %v2325_v25 = vmax.f32 %v2323_v7, %v2324_v13  ;;  %v2333_v28 = vmax.f32 %v2331_v9, %v2332_v30  ;;  %v2341_v4 = vmax.f32 %v2339_v10, %v2340_v31  ;;  %v2349_v34 = vmax.f32 %v2347_v12, %v2348_v32 }
 0x6d8   :  { %v2492_v58 = vrot.slane %v2491_v52, 4  ;;  %v2500_v17 = vrot.slane %v2499_v53, 4  ;;  %v2508_v29 = vrot.slane %v2507_v54, 4  ;;  %v2516_v11 = vrot.slane %v2515_v23, 4 }
 0x6d9   :  { %v2326_v18 = vrot.slane %v2325_v25, 2  ;;  %v2334_v27 = vrot.slane %v2333_v28, 2  ;;  %v2342_v19 = vrot.slane %v2341_v4, 2  ;;  %v2350_v56 = vrot.slane %v2349_v34, 2 }
 0x6da   :  { %v2493_v20 = vmax.f32 %v2491_v52, %v2492_v58  ;;  %v2501_v35 = vmax.f32 %v2499_v53, %v2500_v17  ;;  %v2509_v61 = vmax.f32 %v2507_v54, %v2508_v29  ;;  %v2517_v26 = vmax.f32 %v2515_v23, %v2516_v11 }
 0x6db   :  { %v2327_v24 = vmax.f32 %v2325_v25, %v2326_v18  ;;  %v2335_v14 = vmax.f32 %v2333_v28, %v2334_v27  ;;  %v2343_v15 = vmax.f32 %v2341_v4, %v2342_v19  ;;  %v2351_v16 = vmax.f32 %v2349_v34, %v2350_v56 }
 0x6dc   :  { %v2494_v41 = vrot.slane %v2493_v20, 2  ;;  %v2502_v59 = vrot.slane %v2501_v35, 2  ;;  %v2510_v60 = vrot.slane %v2509_v61, 2  ;;  %v2518_v62 = vrot.slane %v2517_v26, 2 }
 0x6dd   :  { %v2328_v0 = vrot.slane %v2327_v24, 1  ;;  %v2336_v1 = vrot.slane %v2335_v14, 1  ;;  %v2344_v63 = vrot.slane %v2343_v15, 1  ;;  %v2352_v8 = vrot.slane %v2351_v16, 1 }
 0x6de   :  { %v2495_v3 = vmax.f32 %v2493_v20, %v2494_v41  ;;  %v2503_v33 = vmax.f32 %v2501_v35, %v2502_v59  ;;  %v2511_v36 = vmax.f32 %v2509_v61, %v2510_v60  ;;  %v2519_v38 = vmax.f32 %v2517_v26, %v2518_v62 }
 0x6df   :  { %v2329_v40 = vmax.f32 %v2327_v24, %v2328_v0  ;;  %v2337_v42 = vmax.f32 %v2335_v14, %v2336_v1  ;;  %v2345_v43 = vmax.f32 %v2343_v15, %v2344_v63  ;;  %v2353_v44 = vmax.f32 %v2351_v16, %v2352_v8 }
 0x6e0   :  { %v2496_v55 = vrot.slane %v2495_v3, 1  ;;  %v2504_v45 = vrot.slane %v2503_v33, 1  ;;  %v2512_v46 = vrot.slane %v2511_v36, 1  ;;  %v2520_v21 = vrot.slane %v2519_v38, 1 }
 0x6e1   :  { %2330 = vst.msk [vmem:[%s4635_s7 + $0x4] sm:$0x1] %vm2294_vm10, %v2329_v40  ;;  %2338 = vst.msk [vmem:[%s4635_s7 + $0x5] sm:$0x1] %vm2294_vm10, %v2337_v42  ;;  %v2287_v22 = vsel %vm2286_vm6, %v2277_v39, -inf  ;;  %v2297_v37 = vsel %vm2296_vm7, %v2277_v39, -inf }
 0x6e2   :  { %2346 = vst.msk [vmem:[%s4635_s7 + $0x6] sm:$0x1] %vm2294_vm10, %v2345_v43  ;;  %2354 = vst.msk [vmem:[%s4635_s7 + $0x7] sm:$0x1] %vm2294_vm10, %v2353_v44  ;;  %v2306_v57 = vsel %vm2305_vm8, %v2277_v39, -inf  ;;  %v2315_v47 = vsel %vm2314_vm9, %v2277_v39, -inf  ;;  %v2497_v49 = vmax.f32 %v2495_v3, %v2496_v55  ;;  %v2505_v50 = vmax.f32 %v2503_v33, %v2504_v45 }
 0x6e3   :  { %v2513_v51 = vmax.f32 %v2511_v36, %v2512_v46  ;;  %v2521_v2 = vmax.f32 %v2519_v38, %v2520_v21  ;;  %v2288_v5 = vrot.slane %v2287_v22, 4  ;;  %v2298_v6 = vrot.slane %v2297_v37, 4 }
 0x6e4   :  { %v2307_v7 = vrot.slane %v2306_v57, 4  ;;  %v2316_v9 = vrot.slane %v2315_v47, 4  ;;  %2698 = vst.msk [vmem:[%s4635_s7 + $0xc] sm:$0x1] %vm2294_vm10, %v2497_v49  ;;  %2699 = vst.msk [vmem:[%s4635_s7 + $0xd] sm:$0x1] %vm2294_vm10, %v2505_v50 }
 0x6e5   :  { %2700 = vst.msk [vmem:[%s4635_s7 + $0xe] sm:$0x1] %vm2294_vm10, %v2513_v51  ;;  %2701 = vst.msk [vmem:[%s4635_s7 + $0xf] sm:$0x1] %vm2294_vm10, %v2521_v2  ;;  %v2458_v10 = vsel %vm2286_vm6, %v2449_v48, -inf  ;;  %v2467_v12 = vsel %vm2296_vm7, %v2449_v48, -inf  ;;  %v2289_v31 = vmax.f32 %v2287_v22, %v2288_v5  ;;  %v2299_v32 = vmax.f32 %v2297_v37, %v2298_v6 }
 0x6e6   :  { %v2475_v13 = vsel %vm2305_vm8, %v2449_v48, -inf  ;;  %v2483_v30 = vsel %vm2314_vm9, %v2449_v48, -inf  ;;  %v2308_v52 = vmax.f32 %v2306_v57, %v2307_v7  ;;  %v2317_v53 = vmax.f32 %v2315_v47, %v2316_v9 }
 0x6e7   :  { %v2459_v54 = vrot.slane %v2458_v10, 4  ;;  %v2468_v23 = vrot.slane %v2467_v12, 4  ;;  %v2476_v25 = vrot.slane %v2475_v13, 4  ;;  %v2484_v28 = vrot.slane %v2483_v30, 4 }
 0x6e8   :  { %v2290_v4 = vrot.slane %v2289_v31, 2  ;;  %v2300_v34 = vrot.slane %v2299_v32, 2  ;;  %v2309_v58 = vrot.slane %v2308_v52, 2  ;;  %v2318_v17 = vrot.slane %v2317_v53, 2 }
 0x6e9   :  { %v2460_v29 = vmax.f32 %v2458_v10, %v2459_v54  ;;  %v2469_v11 = vmax.f32 %v2467_v12, %v2468_v23  ;;  %v2477_v18 = vmax.f32 %v2475_v13, %v2476_v25  ;;  %v2485_v27 = vmax.f32 %v2483_v30, %v2484_v28 }
 0x6ea   :  { %v2291_v19 = vmax.f32 %v2289_v31, %v2290_v4  ;;  %v2301_v56 = vmax.f32 %v2299_v32, %v2300_v34  ;;  %v2310_v20 = vmax.f32 %v2308_v52, %v2309_v58  ;;  %v2319_v35 = vmax.f32 %v2317_v53, %v2318_v17 }
 0x6eb   :  { %v2461_v61 = vrot.slane %v2460_v29, 2  ;;  %v2470_v26 = vrot.slane %v2469_v11, 2  ;;  %v2478_v24 = vrot.slane %v2477_v18, 2  ;;  %v2486_v14 = vrot.slane %v2485_v27, 2 }
 0x6ec   :  { %v2292_v15 = vrot.slane %v2291_v19, 1  ;;  %v2302_v16 = vrot.slane %v2301_v56, 1  ;;  %v2311_v41 = vrot.slane %v2310_v20, 1  ;;  %v2320_v59 = vrot.slane %v2319_v35, 1 }
 0x6ed   :  { %v2462_v60 = vmax.f32 %v2460_v29, %v2461_v61  ;;  %v2471_v62 = vmax.f32 %v2469_v11, %v2470_v26  ;;  %v2479_v0 = vmax.f32 %v2477_v18, %v2478_v24  ;;  %v2487_v1 = vmax.f32 %v2485_v27, %v2486_v14 }
 0x6ee   :  { %v2293_v63 = vmax.f32 %v2291_v19, %v2292_v15  ;;  %v2303_v8 = vmax.f32 %v2301_v56, %v2302_v16  ;;  %v2312_v3 = vmax.f32 %v2310_v20, %v2311_v41  ;;  %v2321_v33 = vmax.f32 %v2319_v35, %v2320_v59 }
 0x6ef   :  { %v2463_v36 = vrot.slane %v2462_v60, 1  ;;  %v2472_v38 = vrot.slane %v2471_v62, 1  ;;  %v2480_v39 = vrot.slane %v2479_v0, 1  ;;  %v2488_v40 = vrot.slane %v2487_v1, 1 }
 0x6f0   :  { %2295 = vst.msk [vmem:[%s4635_s7] sm:$0x1] %vm2294_vm10, %v2293_v63  ;;  %2304 = vst.msk [vmem:[%s4635_s7 + $0x1] sm:$0x1] %vm2294_vm10, %v2303_v8 }
 0x6f1   :  { %2313 = vst.msk [vmem:[%s4635_s7 + $0x2] sm:$0x1] %vm2294_vm10, %v2312_v3  ;;  %2322 = vst.msk [vmem:[%s4635_s7 + $0x3] sm:$0x1] %vm2294_vm10, %v2321_v33  ;;  %v2464_v42 = vmax.f32 %v2462_v60, %v2463_v36  ;;  %v2473_v43 = vmax.f32 %v2471_v62, %v2472_v38  ;;  %v2481_v44 = vmax.f32 %v2479_v0, %v2480_v39 }
 0x6f2   :  { %v2489_v55 = vmax.f32 %v2487_v1, %v2488_v40 }
 0x6f3   :  { %2694 = vst.msk [vmem:[%s4635_s7 + $0x8] sm:$0x1] %vm2294_vm10, %v2464_v42  ;;  %2695 = vst.msk [vmem:[%s4635_s7 + $0x9] sm:$0x1] %vm2294_vm10, %v2473_v43 }
 0x6f4   :  { %2696 = vst.msk [vmem:[%s4635_s7 + $0xa] sm:$0x1] %vm2294_vm10, %v2481_v44  ;;  %2697 = vst.msk [vmem:[%s4635_s7 + $0xb] sm:$0x1] %vm2294_vm10, %v2489_v55 }

</bundles_post_ra>
